<compile_context>
chip_gen: v7x
topology: tpu7x:2x2x1
jax: 0.10.0
libtpu: 0.0.40
codegen_flags: <defaults>
</compile_context>

<pallas_src>
import functools

import jax
import jax.numpy as jnp
from jax.experimental import pallas as pl
from jax.experimental.pallas import tpu as pltpu

IN_DIM = 6
HIDDEN_DIM = 64
OUT_DIM = 1
DEFAULT_TILE_B = 8192  # multiple of PACK*128 after alignment below


def _cdiv(a, b):
    return -(-a // b)


def _round_up(x, m):
    return _cdiv(x, m) * m


def _chip_defaults():
    """(pack, acc_dtype) per TPU generation.

    v6e/v7x: 256x256 MXU + bf16 VPU -> pack 4, bf16 elementwise.
    v5e and older (128x128 MXU, no bf16 VPU) / unknown: pack 2, f32 elementwise.
    """
    try:
        kind = jax.devices()[0].device_kind.lower()
    except Exception:  # pragma: no cover - no devices at trace time
        kind = ""
    if ("v6" in kind) or ("v7" in kind):
        return 4, "bfloat16"
    return 2, "float32"


def _block_diag(w, pack):
    """diag(w, w, ..., w) repeated `pack` times (tiny, built once per call)."""
    out_f, in_f = w.shape
    z = jnp.zeros((pack * out_f, pack * in_f), w.dtype)
    for k in range(pack):
        z = z.at[k * out_f:(k + 1) * out_f, k * in_f:(k + 1) * in_f].set(w)
    return z


def _disc_kernel(xp_ref,
                 w1_ref, b1_ref,
                 w2_ref, b2_ref,
                 w3_ref, b3_ref,
                 w4_ref, b4_ref,
                 w5_ref, b5_ref,
                 out_ref, *, pack, acc_dtype):
    """Packed, transposed MLP.

    xp_ref : (pack*6,  tbp)  f32   -- pack batch sub-chunks stacked on sublanes
    w1..w4 : block-diagonal bf16 weights, (pack*64, pack*{6,64})
    b1..b4 : (pack*64, 1) in acc_dtype
    w5     : (pack*64, 1) f32,  b5: (1, 1) f32
    out    : (pack, tbp) f32  -- lane-dense
    """
    bf16 = jnp.bfloat16
    adt = jnp.dtype(acc_dtype)

    def layer(w_ref, b_ref, h_bf16):
        a = jnp.dot(w_ref[...], h_bf16, preferred_element_type=adt)
        return jnp.maximum(a + b_ref[...], 0)

    h = layer(w1_ref, b1_ref, xp_ref[...].astype(bf16))
    h = layer(w2_ref, b2_ref, h.astype(bf16))
    h = layer(w3_ref, b3_ref, h.astype(bf16))
    h = layer(w4_ref, b4_ref, h.astype(bf16))

    # Final Linear(64 -> 1): keep it OFF the MXU.  VPU multiply by the packed
    # (pack*64, 1) weight column + per-block XLU cross-sublane reduction.
    hp = h.astype(jnp.float32) * w5_ref[...]                 # (pack*64, tbp)
    parts = [jnp.sum(hp[k * HIDDEN_DIM:(k + 1) * HIDDEN_DIM, :],
                     axis=0, keepdims=True)
             for k in range(pack)]
    out_ref[...] = jnp.concatenate(parts, axis=0) + b5_ref[...]


@functools.partial(jax.jit, static_argnames=("tile_b", "pack", "acc_dtype"))
def _disc_forward_impl(x, params, *, tile_b, pack, acc_dtype):
    w1, b1, w2, b2, w3, b3, w4, b4, w5, b5 = params
    B = x.shape[0]
    adt = jnp.dtype(acc_dtype)

    # ---- tile / grid selection -------------------------------------------
    align = pack * 128                       # tbp must be a multiple of 128
    tb = _round_up(max(int(tile_b), align), align)
    # Prefer >= 2 grid steps so v7x's two TensorCores both get work.
    two_step = _round_up(_cdiv(max(B, 1), 2), align)
    tb = int(min(tb, max(two_step, align)))
    B_pad = int(_round_up(B, tb))
    nt = B_pad // tb
    tbp = tb // pack

    # ---- input packing (layout plumbing, done once per call) --------------
    x_pad = x.astype(jnp.float32)
    if B_pad != B:
        x_pad = jnp.pad(x_pad, ((0, B_pad - B), (0, 0)))
    # batch row i*tb + k*tbp + j  ->  xp[k*IN_DIM + f, i*tbp + j]
    xp = (x_pad.reshape(nt, pack, tbp, IN_DIM)
               .transpose(1, 3, 0, 2)
               .reshape(pack * IN_DIM, nt * tbp))

    # ---- parameter packing (block-diagonal, built ONCE per call) ----------
    bf16 = jnp.bfloat16
    w1k = _block_diag(w1.astype(bf16), pack)                 # (P*64, P*6)
    w2k = _block_diag(w2.astype(bf16), pack)                 # (P*64, P*64)
    w3k = _block_diag(w3.astype(bf16), pack)
    w4k = _block_diag(w4.astype(bf16), pack)
    b1k, b2k, b3k, b4k = (jnp.tile(b.astype(adt), pack).reshape(pack * HIDDEN_DIM, 1)
                          for b in (b1, b2, b3, b4))
    w5k = jnp.tile(w5.reshape(-1).astype(jnp.float32), pack).reshape(pack * HIDDEN_DIM, 1)
    b5k = b5.reshape(1, 1).astype(jnp.float32)
    kernel_params = (w1k, b1k, w2k, b2k, w3k, b3k, w4k, b4k, w5k, b5k)

    # ---- specs -------------------------------------------------------------
    def _resident(shape):
        # Full-array block, constant index_map -> stays VMEM-resident across
        # grid steps (never re-DMA'd).
        return pl.BlockSpec(shape, lambda i: (0, 0))

    in_specs = [pl.BlockSpec((pack * IN_DIM, tbp), lambda i: (0, i))]
    in_specs += [_resident(p.shape) for p in kernel_params]
    out_spec = pl.BlockSpec((pack, tbp), lambda i: (0, i))   # lane-dense output

    flops_per_row = 2 * (IN_DIM * HIDDEN_DIM
                         + 3 * HIDDEN_DIM * HIDDEN_DIM
                         + HIDDEN_DIM * OUT_DIM)
    param_bytes = sum(int(p.size) * p.dtype.itemsize for p in kernel_params)
    cost = pl.CostEstimate(
        flops=flops_per_row * B_pad,
        transcendentals=0,
        bytes_accessed=(IN_DIM * 4 + OUT_DIM * 4) * B_pad + param_bytes,
    )

    out = pl.pallas_call(
        functools.partial(_disc_kernel, pack=pack, acc_dtype=acc_dtype),
        out_shape=jax.ShapeDtypeStruct((pack, nt * tbp), jnp.float32),
        grid=(nt,),
        in_specs=in_specs,
        out_specs=out_spec,
        compiler_params=pltpu.CompilerParams(
            dimension_semantics=("parallel",),
            vmem_limit_bytes=48 * 1024 * 1024),
        cost_estimate=cost,
    )(xp, *kernel_params)

    # Regroup packed output back to batch order and strip padding.
    out = out.reshape(pack, nt, tbp).transpose(1, 0, 2).reshape(B_pad, 1)
    return out[:B]


def disc_forward(x, params, tile_b=DEFAULT_TILE_B, pack=None, acc_dtype=None):
    """x: (B, 6) float32; params: PyTorch-layout [w1,b1,...,w5,b5],
    w_i: (out_features, in_features), b_i: (out_features,). Returns (B, 1)."""
    if pack is None or acc_dtype is None:
        p_def, a_def = _chip_defaults()
        pack = p_def if pack is None else pack
        acc_dtype = a_def if acc_dtype is None else acc_dtype
    return _disc_forward_impl(x, params, tile_b=tile_b, pack=int(pack),
                              acc_dtype=str(acc_dtype))


def init_disc_params(key):
    """Mirrors nn.Linear default init; PyTorch layout: W (out,in), b (out,)."""
    dims = [(IN_DIM, HIDDEN_DIM),
            (HIDDEN_DIM, HIDDEN_DIM),
            (HIDDEN_DIM, HIDDEN_DIM),
            (HIDDEN_DIM, HIDDEN_DIM),
            (HIDDEN_DIM, OUT_DIM)]
    params = []
    for fan_in, fan_out in dims:
        key, kw, kb = jax.random.split(key, 3)
        bound = 1.0 / (fan_in ** 0.5)
        w = jax.random.uniform(kw, (fan_out, fan_in), jnp.float32, -bound, bound)
        b = jax.random.uniform(kb, (fan_out,), jnp.float32, -bound, bound)
        params.extend([w, b])
    return params


def disc_forward_ref_f32(x, params):
    """Pure-JAX f32 reference with exact PyTorch semantics."""
    h = x
    for i in range(0, 8, 2):
        h = jnp.maximum(h @ params[i].T + params[i + 1], 0.0)
    return h @ params[8].T + params[9]


def disc_forward_ref_matched(x, params, acc_dtype="float32"):
    """Reference mirroring the kernel's bf16-matmul / acc_dtype-elementwise math."""
    adt = jnp.dtype(acc_dtype)
    h = x.astype(jnp.float32).T.astype(jnp.bfloat16)          # (6, B) bf16
    for i in range(0, 8, 2):
        w = params[i].astype(jnp.bfloat16)
        b = params[i + 1].reshape(-1, 1).astype(adt)
        h = jnp.maximum(jnp.dot(w, h, preferred_element_type=adt) + b, 0)
        if i < 6:                                             # feed next MXU layer
            h = h.astype(jnp.bfloat16)
    hp = h.astype(jnp.float32) * params[8].reshape(HIDDEN_DIM, 1).astype(jnp.float32)
    o = jnp.sum(hp, axis=0, keepdims=True) + params[9].reshape(1, 1)
    return o.T                                                # (B, 1)


if __name__ == "__main__":
    key = jax.random.PRNGKey(0)
    k_params, k_x1, k_x2 = jax.random.split(key, 3)
    params = init_disc_params(k_params)

    # 1) Small canonical batch, chip-default fast path (pack/bf16 chosen per chip).
    B1 = 8
    x1 = jax.random.normal(k_x1, (B1, IN_DIM), jnp.float32)
    out1 = jax.block_until_ready(disc_forward(x1, params))
    assert out1.shape == (B1, OUT_DIM), out1.shape
    ref1 = disc_forward_ref_f32(x1, params)
    assert jnp.allclose(out1, ref1, atol=1e-1, rtol=1e-1), \
        "fast path mismatch vs f32 reference"

    # 2) Multi-tile batch: exercise both packing factors with f32 matmul outputs
    #    and check tightly against the precision-matched reference.
    B2 = 1030
    x2 = jax.random.normal(k_x2, (B2, IN_DIM), jnp.float32)
    ref2_matched = disc_forward_ref_matched(x2, params, acc_dtype="float32")
    ref2_f32 = disc_forward_ref_f32(x2, params)
    for p in (2, 4):
        out2 = jax.block_until_ready(
            disc_forward(x2, params, pack=p, acc_dtype="float32"))
        assert out2.shape == (B2, OUT_DIM), out2.shape
        assert jnp.allclose(out2, ref2_matched, atol=2e-3, rtol=2e-3), \
            f"pack={p}: mismatch vs matched-precision reference"
        assert jnp.allclose(out2, ref2_f32, atol=5e-2, rtol=5e-2), \
            f"pack={p}: mismatch vs f32 reference"

    print("KERNEL_OK")
</pallas_src>

<mosaic_0001>
module attributes {stable_mosaic.version = 11 : i64} {
  func.func @_disc_kernel(%arg0: i32, %arg1: memref<12x128xf32, #tpu.memory_space<vmem>>, %arg2: memref<128x12xbf16, #tpu.memory_space<vmem>>, %arg3: memref<128x1xf32, #tpu.memory_space<vmem>>, %arg4: memref<128x128xbf16, #tpu.memory_space<vmem>>, %arg5: memref<128x1xf32, #tpu.memory_space<vmem>>, %arg6: memref<128x128xbf16, #tpu.memory_space<vmem>>, %arg7: memref<128x1xf32, #tpu.memory_space<vmem>>, %arg8: memref<128x128xbf16, #tpu.memory_space<vmem>>, %arg9: memref<128x1xf32, #tpu.memory_space<vmem>>, %arg10: memref<128x1xf32, #tpu.memory_space<vmem>>, %arg11: memref<1x1xf32, #tpu.memory_space<vmem>>, %arg12: memref<2x128xf32, #tpu.memory_space<vmem>>) attributes {dimension_semantics = [#tpu.dimension_semantics<parallel>], iteration_bounds = array<i64: 1>, scalar_prefetch = 0 : i64, scratch_operands = 0 : i64, tpu.core_type = #tpu.core_type<tc>, window_params = [{transform_indices = @transform_0, window_bounds = array<i64: 12, 128>}, {pipeline_mode = #tpu.pipeline_mode<synchronous>, transform_indices = @transform_1, window_bounds = array<i64: 128, 12>}, {pipeline_mode = #tpu.pipeline_mode<synchronous>, transform_indices = @transform_2, window_bounds = array<i64: 128, 1>}, {pipeline_mode = #tpu.pipeline_mode<synchronous>, transform_indices = @transform_3, window_bounds = array<i64: 128, 128>}, {pipeline_mode = #tpu.pipeline_mode<synchronous>, transform_indices = @transform_4, window_bounds = array<i64: 128, 1>}, {pipeline_mode = #tpu.pipeline_mode<synchronous>, transform_indices = @transform_5, window_bounds = array<i64: 128, 128>}, {pipeline_mode = #tpu.pipeline_mode<synchronous>, transform_indices = @transform_6, window_bounds = array<i64: 128, 1>}, {pipeline_mode = #tpu.pipeline_mode<synchronous>, transform_indices = @transform_7, window_bounds = array<i64: 128, 128>}, {pipeline_mode = #tpu.pipeline_mode<synchronous>, transform_indices = @transform_8, window_bounds = array<i64: 128, 1>}, {pipeline_mode = #tpu.pipeline_mode<synchronous>, transform_indices = @transform_9, window_bounds = array<i64: 128, 1>}, {pipeline_mode = #tpu.pipeline_mode<synchronous>, transform_indices = @transform_10, window_bounds = array<i64: 1, 1>}, {transform_indices = @transform_11, window_bounds = array<i64: 2, 128>}]} {
    %c0 = arith.constant 0 : index
    %c0_0 = arith.constant 0 : index
    %0 = vector.load %arg1[%c0, %c0_0] : memref<12x128xf32, #tpu.memory_space<vmem>>, vector<12x128xf32>
    %1 = arith.truncf %0 : vector<12x128xf32> to vector<12x128xbf16>
    %c0_1 = arith.constant 0 : index
    %c0_2 = arith.constant 0 : index
    %2 = vector.load %arg2[%c0_1, %c0_2] : memref<128x12xbf16, #tpu.memory_space<vmem>>, vector<128x12xbf16>
    %cst = arith.constant dense<0.000000e+00> : vector<128x128xf32>
    %3 = tpu.matmul %2, %1, %cst {dimension_numbers = #tpu.dot_dimension_numbers<[1], [0], [0], [1], [0, 0, 1, 1], [], []>} : vector<128x12xbf16>, vector<12x128xbf16>, vector<128x128xf32> -> vector<128x128xf32>
    %c0_3 = arith.constant 0 : index
    %c0_4 = arith.constant 0 : index
    %4 = vector.load %arg3[%c0_3, %c0_4] : memref<128x1xf32, #tpu.memory_space<vmem>>, vector<128x1xf32>
    %5 = vector.broadcast %4 : vector<128x1xf32> to vector<128x128xf32>
    %6 = arith.addf %3, %5 : vector<128x128xf32>
    %cst_5 = arith.constant 0.000000e+00 : f32
    %7 = vector.broadcast %cst_5 : f32 to vector<128x128xf32>
    %8 = arith.maximumf %6, %7 : vector<128x128xf32>
    %9 = arith.truncf %8 : vector<128x128xf32> to vector<128x128xbf16>
    %c0_6 = arith.constant 0 : index
    %c0_7 = arith.constant 0 : index
    %10 = vector.load %arg4[%c0_6, %c0_7] : memref<128x128xbf16, #tpu.memory_space<vmem>>, vector<128x128xbf16>
    %cst_8 = arith.constant dense<0.000000e+00> : vector<128x128xf32>
    %11 = tpu.matmul %10, %9, %cst_8 {dimension_numbers = #tpu.dot_dimension_numbers<[1], [0], [0], [1], [0, 0, 1, 1], [], []>} : vector<128x128xbf16>, vector<128x128xbf16>, vector<128x128xf32> -> vector<128x128xf32>
    %c0_9 = arith.constant 0 : index
    %c0_10 = arith.constant 0 : index
    %12 = vector.load %arg5[%c0_9, %c0_10] : memref<128x1xf32, #tpu.memory_space<vmem>>, vector<128x1xf32>
    %13 = vector.broadcast %12 : vector<128x1xf32> to vector<128x128xf32>
    %14 = arith.addf %11, %13 : vector<128x128xf32>
    %cst_11 = arith.constant 0.000000e+00 : f32
    %15 = vector.broadcast %cst_11 : f32 to vector<128x128xf32>
    %16 = arith.maximumf %14, %15 : vector<128x128xf32>
    %17 = arith.truncf %16 : vector<128x128xf32> to vector<128x128xbf16>
    %c0_12 = arith.constant 0 : index
    %c0_13 = arith.constant 0 : index
    %18 = vector.load %arg6[%c0_12, %c0_13] : memref<128x128xbf16, #tpu.memory_space<vmem>>, vector<128x128xbf16>
    %cst_14 = arith.constant dense<0.000000e+00> : vector<128x128xf32>
    %19 = tpu.matmul %18, %17, %cst_14 {dimension_numbers = #tpu.dot_dimension_numbers<[1], [0], [0], [1], [0, 0, 1, 1], [], []>} : vector<128x128xbf16>, vector<128x128xbf16>, vector<128x128xf32> -> vector<128x128xf32>
    %c0_15 = arith.constant 0 : index
    %c0_16 = arith.constant 0 : index
    %20 = vector.load %arg7[%c0_15, %c0_16] : memref<128x1xf32, #tpu.memory_space<vmem>>, vector<128x1xf32>
    %21 = vector.broadcast %20 : vector<128x1xf32> to vector<128x128xf32>
    %22 = arith.addf %19, %21 : vector<128x128xf32>
    %cst_17 = arith.constant 0.000000e+00 : f32
    %23 = vector.broadcast %cst_17 : f32 to vector<128x128xf32>
    %24 = arith.maximumf %22, %23 : vector<128x128xf32>
    %25 = arith.truncf %24 : vector<128x128xf32> to vector<128x128xbf16>
    %c0_18 = arith.constant 0 : index
    %c0_19 = arith.constant 0 : index
    %26 = vector.load %arg8[%c0_18, %c0_19] : memref<128x128xbf16, #tpu.memory_space<vmem>>, vector<128x128xbf16>
    %cst_20 = arith.constant dense<0.000000e+00> : vector<128x128xf32>
    %27 = tpu.matmul %26, %25, %cst_20 {dimension_numbers = #tpu.dot_dimension_numbers<[1], [0], [0], [1], [0, 0, 1, 1], [], []>} : vector<128x128xbf16>, vector<128x128xbf16>, vector<128x128xf32> -> vector<128x128xf32>
    %c0_21 = arith.constant 0 : index
    %c0_22 = arith.constant 0 : index
    %28 = vector.load %arg9[%c0_21, %c0_22] : memref<128x1xf32, #tpu.memory_space<vmem>>, vector<128x1xf32>
    %29 = vector.broadcast %28 : vector<128x1xf32> to vector<128x128xf32>
    %30 = arith.addf %27, %29 : vector<128x128xf32>
    %cst_23 = arith.constant 0.000000e+00 : f32
    %31 = vector.broadcast %cst_23 : f32 to vector<128x128xf32>
    %32 = arith.maximumf %30, %31 : vector<128x128xf32>
    %c0_24 = arith.constant 0 : index
    %c0_25 = arith.constant 0 : index
    %33 = vector.load %arg10[%c0_24, %c0_25] : memref<128x1xf32, #tpu.memory_space<vmem>>, vector<128x1xf32>
    %34 = vector.broadcast %33 : vector<128x1xf32> to vector<128x128xf32>
    %35 = arith.mulf %32, %34 : vector<128x128xf32>
    %36 = vector.extract_strided_slice %35 {offsets = [0, 0], sizes = [64, 128], strides = [1, 1]} : vector<128x128xf32> to vector<64x128xf32>
    %cst_26 = arith.constant dense<0.000000e+00> : vector<128xf32>
    %37 = vector.multi_reduction <add>, %36, %cst_26 [0] : vector<64x128xf32> to vector<128xf32>
    %38 = vector.shape_cast %37 : vector<128xf32> to vector<1x128xf32>
    %39 = vector.extract_strided_slice %35 {offsets = [64, 0], sizes = [64, 128], strides = [1, 1]} : vector<128x128xf32> to vector<64x128xf32>
    %cst_27 = arith.constant dense<0.000000e+00> : vector<128xf32>
    %40 = vector.multi_reduction <add>, %39, %cst_27 [0] : vector<64x128xf32> to vector<128xf32>
    %41 = vector.shape_cast %40 : vector<128xf32> to vector<1x128xf32>
    %42 = tpu.concatenate %38, %41 in 0 : vector<1x128xf32>, vector<1x128xf32> -> vector<2x128xf32>
    %c0_28 = arith.constant 0 : index
    %c0_29 = arith.constant 0 : index
    %43 = vector.load %arg11[%c0_28, %c0_29] : memref<1x1xf32, #tpu.memory_space<vmem>>, vector<1x1xf32>
    %44 = vector.broadcast %43 : vector<1x1xf32> to vector<2x128xf32>
    %45 = arith.addf %42, %44 : vector<2x128xf32>
    %c0_30 = arith.constant 0 : index
    %c0_31 = arith.constant 0 : index
    %46 = vector.load %arg12[%c0_30, %c0_31] : memref<2x128xf32, #tpu.memory_space<vmem>>, vector<2x128xf32>
    tpu.vector_store %arg12[%c0_30, %c0_31], %45 {strides = array<i32>} : memref<2x128xf32, #tpu.memory_space<vmem>>, vector<2x128xf32>,
    return
  }
  func.func @transform_0(%arg0: i32) -> (i32, i32) {
    %c0_i32 = arith.constant 0 : i32
    %c0_i32_0 = arith.constant 0 : i32
    return %c0_i32, %arg0 : i32, i32
  }
  func.func @transform_1(%arg0: i32) -> (i32, i32) {
    %c0_i32 = arith.constant 0 : i32
    %c0_i32_0 = arith.constant 0 : i32
    %c0_i32_1 = arith.constant 0 : i32
    return %c0_i32, %c0_i32_0 : i32, i32
  }
  func.func @transform_2(%arg0: i32) -> (i32, i32) {
    %c0_i32 = arith.constant 0 : i32
    %c0_i32_0 = arith.constant 0 : i32
    %c0_i32_1 = arith.constant 0 : i32
    return %c0_i32, %c0_i32_0 : i32, i32
  }
  func.func @transform_3(%arg0: i32) -> (i32, i32) {
    %c0_i32 = arith.constant 0 : i32
    %c0_i32_0 = arith.constant 0 : i32
    %c0_i32_1 = arith.constant 0 : i32
    return %c0_i32, %c0_i32_0 : i32, i32
  }
  func.func @transform_4(%arg0: i32) -> (i32, i32) {
    %c0_i32 = arith.constant 0 : i32
    %c0_i32_0 = arith.constant 0 : i32
    %c0_i32_1 = arith.constant 0 : i32
    return %c0_i32, %c0_i32_0 : i32, i32
  }
  func.func @transform_5(%arg0: i32) -> (i32, i32) {
    %c0_i32 = arith.constant 0 : i32
    %c0_i32_0 = arith.constant 0 : i32
    %c0_i32_1 = arith.constant 0 : i32
    return %c0_i32, %c0_i32_0 : i32, i32
  }
  func.func @transform_6(%arg0: i32) -> (i32, i32) {
    %c0_i32 = arith.constant 0 : i32
    %c0_i32_0 = arith.constant 0 : i32
    %c0_i32_1 = arith.constant 0 : i32
    return %c0_i32, %c0_i32_0 : i32, i32
  }
  func.func @transform_7(%arg0: i32) -> (i32, i32) {
    %c0_i32 = arith.constant 0 : i32
    %c0_i32_0 = arith.constant 0 : i32
    %c0_i32_1 = arith.constant 0 : i32
    return %c0_i32, %c0_i32_0 : i32, i32
  }
  func.func @transform_8(%arg0: i32) -> (i32, i32) {
    %c0_i32 = arith.constant 0 : i32
    %c0_i32_0 = arith.constant 0 : i32
    %c0_i32_1 = arith.constant 0 : i32
    return %c0_i32, %c0_i32_0 : i32, i32
  }
  func.func @transform_9(%arg0: i32) -> (i32, i32) {
    %c0_i32 = arith.constant 0 : i32
    %c0_i32_0 = arith.constant 0 : i32
    %c0_i32_1 = arith.constant 0 : i32
    return %c0_i32, %c0_i32_0 : i32, i32
  }
  func.func @transform_10(%arg0: i32) -> (i32, i32) {
    %c0_i32 = arith.constant 0 : i32
    %c0_i32_0 = arith.constant 0 : i32
    %c0_i32_1 = arith.constant 0 : i32
    return %c0_i32, %c0_i32_0 : i32, i32
  }
  func.func @transform_11(%arg0: i32) -> (i32, i32) {
    %c0_i32 = arith.constant 0 : i32
    %c0_i32_0 = arith.constant 0 : i32
    return %c0_i32, %arg0 : i32, i32
  }
}

</mosaic_0001>

<bundles_post_ra>
// kernel: tile.27
= control target key start
LH: loop header
LB: loop body
LE: loop exit
PB: predicated region body
PF: predicated region fallthrough
CT: control target
= control target key end

     0   :  { %s22_s0 = inlined_call_operand.vmem [shape: f32[64], index: 0, kind: input, shape index: {}]   ;;  %s23_s1 = inlined_call_operand.vmem [shape: f32[2,64], index: 1, kind: output, shape index: {}]  }
   0x1   :  { %v4_v0 = vld [vmem:[%s22_s0] ss:$0 sm:$0xff] }
   0x2   :  { %5 = vst [vmem:[%s23_s1] sm:$0x3] %v4_v0 }

// kernel: tile.0
= control target key start
LH: loop header
LB: loop body
LE: loop exit
PB: predicated region body
PF: predicated region fallthrough
CT: control target
= control target key end

     0   :  { %s706_s8 = smov 125   ;;  %s707_s9 = smov 126   ;;  %vm7_vm0 = vcmask 7168   ;;  %s1293_s0 = inlined_call_operand.vmem [shape: f32[2,64], index: 0, kind: input, shape index: {}]   ;;  %s1294_s1 = inlined_call_operand.vmem [shape: f32[128,1], index: 1, kind: output, shape index: {}]  }
   0x1   :  { %v4_v0 = vld [vmem:[%s1293_s0] sm:$0x3]  ;;  %s705_s0 = smov 127   ;;  %s708_s10 = smov 124  }
   0x2   :  { %5 = vst [vmem:[#allocation0] sm:$0x3] %v4_v0  ;;  %s709_s11 = smov 123   ;;  %s710_s12 = smov 122  }
   0x3   :  { %s711_s13 = smov 121   ;;  %s712_s14 = smov 120  }
   0x4   :  { %s713_s15 = smov 119   ;;  %s714_s16 = smov 118  }
   0x5   :  { %s715_s17 = smov 117   ;;  %s716_s18 = smov 116  }
   0x6   :  { %s717_s19 = smov 115   ;;  %s718_s20 = smov 114  }
   0x7   :  { %s719_s21 = smov 113   ;;  %s720_s22 = smov 112  }
   0x8   :  { %s721_s23 = smov 111   ;;  %s722_s24 = smov 110  }
   0x9   :  { %v11_v1 = vld [vmem:[#allocation0] sm:$0x3]   ;;  %s723_s25 = smov 109   ;;  %s724_s26 = smov 108  }
   0xa   :  { %v27_v2 = vld [vmem:[#allocation0] sm:$0x3]   ;;  %12 = vrot.lane.b32.xlu0 %v11_v1, %s705_s0  ;;  %s725_s27 = smov 107   ;;  %s726_s28 = smov 106  }
   0xb   :  { %28 = vrot.lane.b32.xlu1 %v27_v2, %s706_s8  ;;  %v19_v3 = vld [vmem:[#allocation0] sm:$0x3]   ;;  %s727_s29 = smov 105   ;;  %s728_s30 = smov 104  }
   0xc   :  { %v35_v4 = vld [vmem:[#allocation0] sm:$0x3]   ;;  %s729_s2 = smov 103   ;;  %s730_s3 = smov 102  }
   0xd   :  { %v43_v5 = vld [vmem:[#allocation0] sm:$0x3]   ;;  %s731_s4 = smov 101   ;;  %s732_s5 = smov 100  }
   0xe   :  { %20 = vrot.lane.b32.xlu0 %v19_v3, %s707_s9  ;;  %v51_v6 = vld [vmem:[#allocation0] sm:$0x3]   ;;  %s733_s6 = smov 99   ;;  %s734_s7 = smov 98  }
   0xf   :  { %36 = vrot.lane.b32.xlu1 %v35_v4, %s708_s10  ;;  %v59_v7 = vld [vmem:[#allocation0] sm:$0x3]   ;;  %s735_s0 = smov 97   ;;  %s736_s8 = smov 96  }
  0x10   :  { %v67_v8 = vld [vmem:[#allocation0] sm:$0x3]   ;;  %s737_s9 = smov 95   ;;  %s738_s10 = smov 94  }
  0x11   :  { %v75_v9 = vld [vmem:[#allocation0] sm:$0x3]  }
  0x12   :  { %44 = vrot.lane.b32.xlu0 %v43_v5, %s709_s11  ;;  %v83_v10 = vld [vmem:[#allocation0] sm:$0x3]   ;;  %s739_s11 = smov 93  }
  0x13   :  { %52 = vrot.lane.b32.xlu1 %v51_v6, %s710_s12  ;;  %v91_v11 = vld [vmem:[#allocation0] sm:$0x3]   ;;  %s740_s12 = smov 92  }
  0x14   :  { %v99_v12 = vld [vmem:[#allocation0] sm:$0x3]  }
  0x15   :  { %v107_v13 = vld [vmem:[#allocation0] sm:$0x3]  }
  0x16   :  { %60 = vrot.lane.b32.xlu0 %v59_v7, %s711_s13  ;;  %v115_v14 = vld [vmem:[#allocation0] sm:$0x3]   ;;  %s741_s13 = smov 91  }
  0x17   :  { %68 = vrot.lane.b32.xlu1 %v67_v8, %s712_s14  ;;  %v123_v15 = vld [vmem:[#allocation0] sm:$0x3]   ;;  %s742_s14 = smov 90  }
  0x18   :  { %v131_v16 = vld [vmem:[#allocation0] sm:$0x3]  }
  0x19   :  { %v139_v17 = vld [vmem:[#allocation0] sm:$0x3]  }
  0x1a   :  { %76 = vrot.lane.b32.xlu0 %v75_v9, %s713_s15  ;;  %v147_v18 = vld [vmem:[#allocation0] sm:$0x3]   ;;  %s743_s15 = smov 89  }
  0x1b   :  { %84 = vrot.lane.b32.xlu1 %v83_v10, %s714_s16  ;;  %v155_v19 = vld [vmem:[#allocation0] sm:$0x3]   ;;  %s744_s16 = smov 88  }
  0x1c   :  { %v163_v20 = vld [vmem:[#allocation0] sm:$0x3]  }
  0x1d   :  { %v171_v21 = vld [vmem:[#allocation0] sm:$0x3]  }
  0x1e   :  { %92 = vrot.lane.b32.xlu0 %v91_v11, %s715_s17  ;;  %v179_v22 = vld [vmem:[#allocation0] sm:$0x3]   ;;  %s745_s17 = smov 87  }
  0x1f   :  { %100 = vrot.lane.b32.xlu1 %v99_v12, %s716_s18  ;;  %v187_v23 = vld [vmem:[#allocation0] sm:$0x3]   ;;  %s746_s18 = smov 86  }
  0x20   :  { %v195_v24 = vld [vmem:[#allocation0] sm:$0x3]  }
  0x21   :  { %v203_v25 = vld [vmem:[#allocation0] sm:$0x3]  }
  0x22   :  { %108 = vrot.lane.b32.xlu0 %v107_v13, %s717_s19  ;;  %v211_v26 = vld [vmem:[#allocation0] sm:$0x3]   ;;  %s747_s19 = smov 85  }
  0x23   :  { %116 = vrot.lane.b32.xlu1 %v115_v14, %s718_s20  ;;  %v219_v27 = vld [vmem:[#allocation0] sm:$0x3]   ;;  %s748_s20 = smov 84  }
  0x24   :  { %v227_v28 = vld [vmem:[#allocation0] sm:$0x3]  }
  0x25   :  { %v235_v29 = vld [vmem:[#allocation0] sm:$0x3]  }
  0x26   :  { %124 = vrot.lane.b32.xlu0 %v123_v15, %s719_s21  ;;  %v243_v30 = vld [vmem:[#allocation0] sm:$0x3]   ;;  %s749_s21 = smov 83  }
  0x27   :  { %132 = vrot.lane.b32.xlu1 %v131_v16, %s720_s22  ;;  %v251_v31 = vld [vmem:[#allocation0] sm:$0x3]   ;;  %s750_s22 = smov 82  }
  0x28   :  { %v259_v32 = vld [vmem:[#allocation0] sm:$0x3]  }
  0x29   :  { %v267_v33 = vld [vmem:[#allocation0] sm:$0x3]  }
  0x2a   :  { %140 = vrot.lane.b32.xlu0 %v139_v17, %s721_s23  ;;  %v275_v34 = vld [vmem:[#allocation0] sm:$0x3]   ;;  %s751_s23 = smov 81  }
  0x2b   :  { %148 = vrot.lane.b32.xlu1 %v147_v18, %s722_s24  ;;  %v283_v35 = vld [vmem:[#allocation0] sm:$0x3]   ;;  %s752_s24 = smov 80  }
  0x2c   :  { %v291_v36 = vld [vmem:[#allocation0] sm:$0x3]  }
  0x2d   :  { %v299_v37 = vld [vmem:[#allocation0] sm:$0x3]  }
  0x2e   :  { %156 = vrot.lane.b32.xlu0 %v155_v19, %s723_s25  ;;  %v307_v38 = vld [vmem:[#allocation0] sm:$0x3]   ;;  %s753_s25 = smov 79  }
  0x2f   :  { %164 = vrot.lane.b32.xlu1 %v163_v20, %s724_s26  ;;  %v315_v39 = vld [vmem:[#allocation0] sm:$0x3]   ;;  %s754_s26 = smov 78  }
  0x30   :  { %v323_v40 = vld [vmem:[#allocation0] sm:$0x3]  }
  0x31   :  { %v331_v41 = vld [vmem:[#allocation0] sm:$0x3]  }
  0x32   :  { %172 = vrot.lane.b32.xlu0 %v171_v21, %s725_s27  ;;  %v339_v42 = vld [vmem:[#allocation0] sm:$0x3]   ;;  %s755_s27 = smov 77  }
  0x33   :  { %180 = vrot.lane.b32.xlu1 %v179_v22, %s726_s28  ;;  %v347_v43 = vld [vmem:[#allocation0] sm:$0x3]   ;;  %s756_s28 = smov 76  }
  0x34   :  { %v355_v44 = vld [vmem:[#allocation0] sm:$0x3]  }
  0x35   :  { %v363_v45 = vld [vmem:[#allocation0] sm:$0x3]  }
  0x36   :  { %188 = vrot.lane.b32.xlu0 %v187_v23, %s727_s29  ;;  %v371_v46 = vld [vmem:[#allocation0] sm:$0x3]   ;;  %s757_s29 = smov 75  }
  0x37   :  { %196 = vrot.lane.b32.xlu1 %v195_v24, %s728_s30  ;;  %v379_v47 = vld [vmem:[#allocation0] sm:$0x3]   ;;  %s758_s30 = smov 74  }
  0x38   :  { %v387_v48 = vld [vmem:[#allocation0] sm:$0x3]  }
  0x39   :  { %v395_v49 = vld [vmem:[#allocation0] sm:$0x3]  }
  0x3a   :  { %204 = vrot.lane.b32.xlu0 %v203_v25, %s729_s2  ;;  %v403_v50 = vld [vmem:[#allocation0] sm:$0x3]   ;;  %s759_s2 = smov 73  }
  0x3b   :  { %212 = vrot.lane.b32.xlu1 %v211_v26, %s730_s3  ;;  %v411_v51 = vld [vmem:[#allocation0] sm:$0x3]   ;;  %s760_s3 = smov 72  }
  0x3c   :  { %v419_v52 = vld [vmem:[#allocation0] sm:$0x3]  }
  0x3d   :  { %v427_v53 = vld [vmem:[#allocation0] sm:$0x3]  }
  0x3e   :  { %220 = vrot.lane.b32.xlu0 %v219_v27, %s731_s4  ;;  %v435_v54 = vld [vmem:[#allocation0] sm:$0x3]  }
  0x3f   :  { %228 = vrot.lane.b32.xlu1 %v227_v28, %s732_s5  ;;  %v443_v55 = vld [vmem:[#allocation0] sm:$0x3]  }
  0x40   :  { %v451_v56 = vld [vmem:[#allocation0] sm:$0x3]  }
  0x41   :  { %v459_v57 = vld [vmem:[#allocation0] sm:$0x3]  }
  0x42   :  { %236 = vrot.lane.b32.xlu0 %v235_v29, %s733_s6  ;;  %v467_v58 = vld [vmem:[#allocation0] sm:$0x3]  }
  0x43   :  { %244 = vrot.lane.b32.xlu1 %v243_v30, %s734_s7  ;;  %v6_v59 = vld [vmem:[#allocation0] sm:$0x3]  }
  0x44   :  { %8 = vst.msk [vmem:[%s1294_s1] sm:$0x1] %vm7_vm0, %v6_v59   ;;  %515 = vst.msk [vmem:[%s1294_s1 + $0x3f] sm:$0x2] %vm7_vm0, %v6_v59   ;;  %v475_v60 = vld [vmem:[#allocation0] sm:$0x3]  }
  0x45   :  { %v483_v61 = vld [vmem:[#allocation0] sm:$0x3]  }
  0x46   :  { %252 = vrot.lane.b32.xlu0 %v251_v31, %s735_s0  ;;  %s761_s0 = smov 71   ;;  %v491_v0 = vld [vmem:[#allocation0] sm:$0x3]  }
  0x47   :  { %260 = vrot.lane.b32.xlu1 %v259_v32, %s736_s8  ;;  %s762_s8 = smov 70   ;;  %v499_v1 = vld [vmem:[#allocation0] sm:$0x3]  }
  0x48   :  { %v507_v4 = vld [vmem:[#allocation0] sm:$0x3]  }
  0x4a   :  { %268 = vrot.lane.b32.xlu0 %v267_v33, %s737_s9 }
  0x4b   :  { %276 = vrot.lane.b32.xlu1 %v275_v34, %s738_s10 }
  0x4e   :  { %284 = vrot.lane.b32.xlu0 %v283_v35, %s739_s11 }
  0x4f   :  { %292 = vrot.lane.b32.xlu1 %v291_v36, %s740_s12 }
  0x52   :  { %300 = vrot.lane.b32.xlu0 %v299_v37, %s741_s13 }
  0x53   :  { %308 = vrot.lane.b32.xlu1 %v307_v38, %s742_s14 }
  0x56   :  { %316 = vrot.lane.b32.xlu0 %v315_v39, %s743_s15 }
  0x57   :  { %324 = vrot.lane.b32.xlu1 %v323_v40, %s744_s16 }
  0x5a   :  { %332 = vrot.lane.b32.xlu0 %v331_v41, %s745_s17  ;;  %s763_s17 = smov 69  }
  0x5b   :  { %340 = vrot.lane.b32.xlu1 %v339_v42, %s746_s18  ;;  %s764_s18 = smov 68  }
  0x5e   :  { %348 = vrot.lane.b32.xlu0 %v347_v43, %s747_s19 }
  0x5f   :  { %356 = vrot.lane.b32.xlu1 %v355_v44, %s748_s20 }
  0x62   :  { %364 = vrot.lane.b32.xlu0 %v363_v45, %s749_s21 }
  0x63   :  { %372 = vrot.lane.b32.xlu1 %v371_v46, %s750_s22 }
  0x66   :  { %380 = vrot.lane.b32.xlu0 %v379_v47, %s751_s23 }
  0x67   :  { %388 = vrot.lane.b32.xlu1 %v387_v48, %s752_s24 }
  0x6a   :  { %396 = vrot.lane.b32.xlu0 %v395_v49, %s753_s25 }
  0x6b   :  { %404 = vrot.lane.b32.xlu1 %v403_v50, %s754_s26 }
  0x6e   :  { %412 = vrot.lane.b32.xlu0 %v411_v51, %s755_s27  ;;  %s765_s27 = smov 67  }
  0x6f   :  { %420 = vrot.lane.b32.xlu1 %v419_v52, %s756_s28  ;;  %s766_s28 = smov 66  }
  0x72   :  { %428 = vrot.lane.b32.xlu0 %v427_v53, %s757_s29 }
  0x73   :  { %436 = vrot.lane.b32.xlu1 %v435_v54, %s758_s30 }
  0x76   :  { %444 = vrot.lane.b32.xlu0 %v443_v55, %s759_s2 }
  0x77   :  { %452 = vrot.lane.b32.xlu1 %v451_v56, %s760_s3 }
  0x7a   :  { %460 = vrot.lane.b32.xlu0 %v459_v57, %s761_s0  ;;  %s767_s0 = smov 65  }
  0x7b   :  { %468 = vrot.lane.b32.xlu1 %v467_v58, %s762_s8 }
  0x7c   :  { %v13_v62 = vpop.permute.xlu0 %12  }
  0x7d   :  { %v29_v63 = vpop.permute.xlu1 %28   ;;  %516 = vst.msk [vmem:[%s1294_s1 + $0x1] sm:$0x1] %vm7_vm0, %v13_v62   ;;  %517 = vst.msk [vmem:[%s1294_s1 + $0x40] sm:$0x2] %vm7_vm0, %v13_v62  }
  0x7e   :  { %520 = vst.msk [vmem:[%s1294_s1 + $0x3] sm:$0x1] %vm7_vm0, %v29_v63   ;;  %521 = vst.msk [vmem:[%s1294_s1 + $0x42] sm:$0x2] %vm7_vm0, %v29_v63   ;;  %476 = vrot.lane.b32.xlu0 %v475_v60, %s763_s17 }
  0x7f   :  { %484 = vrot.lane.b32.xlu1 %v483_v61, %s764_s18 }
  0x80   :  { %v21_v2 = vpop.permute.xlu0 %20  }
  0x81   :  { %v37_v3 = vpop.permute.xlu1 %36   ;;  %518 = vst.msk [vmem:[%s1294_s1 + $0x2] sm:$0x1] %vm7_vm0, %v21_v2   ;;  %519 = vst.msk [vmem:[%s1294_s1 + $0x41] sm:$0x2] %vm7_vm0, %v21_v2  }
  0x82   :  { %522 = vst.msk [vmem:[%s1294_s1 + $0x4] sm:$0x1] %vm7_vm0, %v37_v3   ;;  %523 = vst.msk [vmem:[%s1294_s1 + $0x43] sm:$0x2] %vm7_vm0, %v37_v3   ;;  %492 = vrot.lane.b32.xlu0 %v491_v0, %s765_s27 }
  0x83   :  { %500 = vrot.lane.b32.xlu1 %v499_v1, %s766_s28 }
  0x84   :  { %v45_v5 = vpop.permute.xlu0 %44  }
  0x85   :  { %v53_v6 = vpop.permute.xlu1 %52   ;;  %524 = vst.msk [vmem:[%s1294_s1 + $0x5] sm:$0x1] %vm7_vm0, %v45_v5   ;;  %525 = vst.msk [vmem:[%s1294_s1 + $0x44] sm:$0x2] %vm7_vm0, %v45_v5  }
  0x86   :  { %526 = vst.msk [vmem:[%s1294_s1 + $0x6] sm:$0x1] %vm7_vm0, %v53_v6   ;;  %527 = vst.msk [vmem:[%s1294_s1 + $0x45] sm:$0x2] %vm7_vm0, %v53_v6   ;;  %508 = vrot.lane.b32.xlu0 %v507_v4, %s767_s0 }
  0x88   :  { %v61_v7 = vpop.permute.xlu0 %60  }
  0x89   :  { %v69_v8 = vpop.permute.xlu1 %68   ;;  %528 = vst.msk [vmem:[%s1294_s1 + $0x7] sm:$0x1] %vm7_vm0, %v61_v7   ;;  %529 = vst.msk [vmem:[%s1294_s1 + $0x46] sm:$0x2] %vm7_vm0, %v61_v7  }
  0x8a   :  { %530 = vst.msk [vmem:[%s1294_s1 + $0x8] sm:$0x1] %vm7_vm0, %v69_v8   ;;  %531 = vst.msk [vmem:[%s1294_s1 + $0x47] sm:$0x2] %vm7_vm0, %v69_v8  }
  0x8c   :  { %v77_v9 = vpop.permute.xlu0 %76  }
  0x8d   :  { %v85_v10 = vpop.permute.xlu1 %84   ;;  %532 = vst.msk [vmem:[%s1294_s1 + $0x9] sm:$0x1] %vm7_vm0, %v77_v9   ;;  %533 = vst.msk [vmem:[%s1294_s1 + $0x48] sm:$0x2] %vm7_vm0, %v77_v9  }
  0x8e   :  { %534 = vst.msk [vmem:[%s1294_s1 + $0xa] sm:$0x1] %vm7_vm0, %v85_v10   ;;  %535 = vst.msk [vmem:[%s1294_s1 + $0x49] sm:$0x2] %vm7_vm0, %v85_v10  }
  0x90   :  { %v93_v11 = vpop.permute.xlu0 %92  }
  0x91   :  { %v101_v12 = vpop.permute.xlu1 %100   ;;  %536 = vst.msk [vmem:[%s1294_s1 + $0xb] sm:$0x1] %vm7_vm0, %v93_v11   ;;  %537 = vst.msk [vmem:[%s1294_s1 + $0x4a] sm:$0x2] %vm7_vm0, %v93_v11  }
  0x92   :  { %538 = vst.msk [vmem:[%s1294_s1 + $0xc] sm:$0x1] %vm7_vm0, %v101_v12   ;;  %539 = vst.msk [vmem:[%s1294_s1 + $0x4b] sm:$0x2] %vm7_vm0, %v101_v12  }
  0x94   :  { %v109_v13 = vpop.permute.xlu0 %108  }
  0x95   :  { %v117_v14 = vpop.permute.xlu1 %116   ;;  %540 = vst.msk [vmem:[%s1294_s1 + $0xd] sm:$0x1] %vm7_vm0, %v109_v13   ;;  %541 = vst.msk [vmem:[%s1294_s1 + $0x4c] sm:$0x2] %vm7_vm0, %v109_v13  }
  0x96   :  { %542 = vst.msk [vmem:[%s1294_s1 + $0xe] sm:$0x1] %vm7_vm0, %v117_v14   ;;  %543 = vst.msk [vmem:[%s1294_s1 + $0x4d] sm:$0x2] %vm7_vm0, %v117_v14  }
  0x98   :  { %v125_v15 = vpop.permute.xlu0 %124  }
  0x99   :  { %v133_v16 = vpop.permute.xlu1 %132   ;;  %544 = vst.msk [vmem:[%s1294_s1 + $0xf] sm:$0x1] %vm7_vm0, %v125_v15   ;;  %545 = vst.msk [vmem:[%s1294_s1 + $0x4e] sm:$0x2] %vm7_vm0, %v125_v15  }
  0x9a   :  { %546 = vst.msk [vmem:[%s1294_s1 + $0x10] sm:$0x1] %vm7_vm0, %v133_v16   ;;  %547 = vst.msk [vmem:[%s1294_s1 + $0x4f] sm:$0x2] %vm7_vm0, %v133_v16  }
  0x9c   :  { %v141_v17 = vpop.permute.xlu0 %140  }
  0x9d   :  { %v149_v18 = vpop.permute.xlu1 %148   ;;  %548 = vst.msk [vmem:[%s1294_s1 + $0x11] sm:$0x1] %vm7_vm0, %v141_v17   ;;  %549 = vst.msk [vmem:[%s1294_s1 + $0x50] sm:$0x2] %vm7_vm0, %v141_v17  }
  0x9e   :  { %550 = vst.msk [vmem:[%s1294_s1 + $0x12] sm:$0x1] %vm7_vm0, %v149_v18   ;;  %551 = vst.msk [vmem:[%s1294_s1 + $0x51] sm:$0x2] %vm7_vm0, %v149_v18  }
  0xa0   :  { %v157_v19 = vpop.permute.xlu0 %156  }
  0xa1   :  { %v165_v20 = vpop.permute.xlu1 %164   ;;  %552 = vst.msk [vmem:[%s1294_s1 + $0x13] sm:$0x1] %vm7_vm0, %v157_v19   ;;  %553 = vst.msk [vmem:[%s1294_s1 + $0x52] sm:$0x2] %vm7_vm0, %v157_v19  }
  0xa2   :  { %554 = vst.msk [vmem:[%s1294_s1 + $0x14] sm:$0x1] %vm7_vm0, %v165_v20   ;;  %555 = vst.msk [vmem:[%s1294_s1 + $0x53] sm:$0x2] %vm7_vm0, %v165_v20  }
  0xa4   :  { %v173_v21 = vpop.permute.xlu0 %172  }
  0xa5   :  { %v181_v22 = vpop.permute.xlu1 %180   ;;  %556 = vst.msk [vmem:[%s1294_s1 + $0x15] sm:$0x1] %vm7_vm0, %v173_v21   ;;  %557 = vst.msk [vmem:[%s1294_s1 + $0x54] sm:$0x2] %vm7_vm0, %v173_v21  }
  0xa6   :  { %558 = vst.msk [vmem:[%s1294_s1 + $0x16] sm:$0x1] %vm7_vm0, %v181_v22   ;;  %559 = vst.msk [vmem:[%s1294_s1 + $0x55] sm:$0x2] %vm7_vm0, %v181_v22  }
  0xa8   :  { %v189_v23 = vpop.permute.xlu0 %188  }
  0xa9   :  { %v197_v24 = vpop.permute.xlu1 %196   ;;  %560 = vst.msk [vmem:[%s1294_s1 + $0x17] sm:$0x1] %vm7_vm0, %v189_v23   ;;  %561 = vst.msk [vmem:[%s1294_s1 + $0x56] sm:$0x2] %vm7_vm0, %v189_v23  }
  0xaa   :  { %562 = vst.msk [vmem:[%s1294_s1 + $0x18] sm:$0x1] %vm7_vm0, %v197_v24   ;;  %563 = vst.msk [vmem:[%s1294_s1 + $0x57] sm:$0x2] %vm7_vm0, %v197_v24  }
  0xac   :  { %v205_v25 = vpop.permute.xlu0 %204  }
  0xad   :  { %v213_v26 = vpop.permute.xlu1 %212   ;;  %564 = vst.msk [vmem:[%s1294_s1 + $0x19] sm:$0x1] %vm7_vm0, %v205_v25   ;;  %565 = vst.msk [vmem:[%s1294_s1 + $0x58] sm:$0x2] %vm7_vm0, %v205_v25  }
  0xae   :  { %566 = vst.msk [vmem:[%s1294_s1 + $0x1a] sm:$0x1] %vm7_vm0, %v213_v26   ;;  %567 = vst.msk [vmem:[%s1294_s1 + $0x59] sm:$0x2] %vm7_vm0, %v213_v26  }
  0xb0   :  { %v221_v27 = vpop.permute.xlu0 %220  }
  0xb1   :  { %v229_v28 = vpop.permute.xlu1 %228   ;;  %568 = vst.msk [vmem:[%s1294_s1 + $0x1b] sm:$0x1] %vm7_vm0, %v221_v27   ;;  %569 = vst.msk [vmem:[%s1294_s1 + $0x5a] sm:$0x2] %vm7_vm0, %v221_v27  }
  0xb2   :  { %570 = vst.msk [vmem:[%s1294_s1 + $0x1c] sm:$0x1] %vm7_vm0, %v229_v28   ;;  %571 = vst.msk [vmem:[%s1294_s1 + $0x5b] sm:$0x2] %vm7_vm0, %v229_v28  }
  0xb4   :  { %v237_v29 = vpop.permute.xlu0 %236  }
  0xb5   :  { %v245_v30 = vpop.permute.xlu1 %244   ;;  %572 = vst.msk [vmem:[%s1294_s1 + $0x1d] sm:$0x1] %vm7_vm0, %v237_v29   ;;  %573 = vst.msk [vmem:[%s1294_s1 + $0x5c] sm:$0x2] %vm7_vm0, %v237_v29  }
  0xb6   :  { %574 = vst.msk [vmem:[%s1294_s1 + $0x1e] sm:$0x1] %vm7_vm0, %v245_v30   ;;  %575 = vst.msk [vmem:[%s1294_s1 + $0x5d] sm:$0x2] %vm7_vm0, %v245_v30  }
  0xb8   :  { %v253_v31 = vpop.permute.xlu0 %252  }
  0xb9   :  { %v261_v32 = vpop.permute.xlu1 %260   ;;  %576 = vst.msk [vmem:[%s1294_s1 + $0x1f] sm:$0x1] %vm7_vm0, %v253_v31   ;;  %577 = vst.msk [vmem:[%s1294_s1 + $0x5e] sm:$0x2] %vm7_vm0, %v253_v31  }
  0xba   :  { %578 = vst.msk [vmem:[%s1294_s1 + $0x20] sm:$0x1] %vm7_vm0, %v261_v32   ;;  %579 = vst.msk [vmem:[%s1294_s1 + $0x5f] sm:$0x2] %vm7_vm0, %v261_v32  }
  0xbc   :  { %v269_v33 = vpop.permute.xlu0 %268  }
  0xbd   :  { %v277_v34 = vpop.permute.xlu1 %276   ;;  %580 = vst.msk [vmem:[%s1294_s1 + $0x21] sm:$0x1] %vm7_vm0, %v269_v33   ;;  %581 = vst.msk [vmem:[%s1294_s1 + $0x60] sm:$0x2] %vm7_vm0, %v269_v33  }
  0xbe   :  { %582 = vst.msk [vmem:[%s1294_s1 + $0x22] sm:$0x1] %vm7_vm0, %v277_v34   ;;  %583 = vst.msk [vmem:[%s1294_s1 + $0x61] sm:$0x2] %vm7_vm0, %v277_v34  }
  0xc0   :  { %v285_v35 = vpop.permute.xlu0 %284  }
  0xc1   :  { %v293_v36 = vpop.permute.xlu1 %292   ;;  %584 = vst.msk [vmem:[%s1294_s1 + $0x23] sm:$0x1] %vm7_vm0, %v285_v35   ;;  %585 = vst.msk [vmem:[%s1294_s1 + $0x62] sm:$0x2] %vm7_vm0, %v285_v35  }
  0xc2   :  { %586 = vst.msk [vmem:[%s1294_s1 + $0x24] sm:$0x1] %vm7_vm0, %v293_v36   ;;  %587 = vst.msk [vmem:[%s1294_s1 + $0x63] sm:$0x2] %vm7_vm0, %v293_v36  }
  0xc4   :  { %v301_v37 = vpop.permute.xlu0 %300  }
  0xc5   :  { %v309_v38 = vpop.permute.xlu1 %308   ;;  %588 = vst.msk [vmem:[%s1294_s1 + $0x25] sm:$0x1] %vm7_vm0, %v301_v37   ;;  %589 = vst.msk [vmem:[%s1294_s1 + $0x64] sm:$0x2] %vm7_vm0, %v301_v37  }
  0xc6   :  { %590 = vst.msk [vmem:[%s1294_s1 + $0x26] sm:$0x1] %vm7_vm0, %v309_v38   ;;  %591 = vst.msk [vmem:[%s1294_s1 + $0x65] sm:$0x2] %vm7_vm0, %v309_v38  }
  0xc8   :  { %v317_v39 = vpop.permute.xlu0 %316  }
  0xc9   :  { %v325_v40 = vpop.permute.xlu1 %324   ;;  %592 = vst.msk [vmem:[%s1294_s1 + $0x27] sm:$0x1] %vm7_vm0, %v317_v39   ;;  %593 = vst.msk [vmem:[%s1294_s1 + $0x66] sm:$0x2] %vm7_vm0, %v317_v39  }
  0xca   :  { %594 = vst.msk [vmem:[%s1294_s1 + $0x28] sm:$0x1] %vm7_vm0, %v325_v40   ;;  %595 = vst.msk [vmem:[%s1294_s1 + $0x67] sm:$0x2] %vm7_vm0, %v325_v40  }
  0xcc   :  { %v333_v41 = vpop.permute.xlu0 %332  }
  0xcd   :  { %v341_v42 = vpop.permute.xlu1 %340   ;;  %596 = vst.msk [vmem:[%s1294_s1 + $0x29] sm:$0x1] %vm7_vm0, %v333_v41   ;;  %597 = vst.msk [vmem:[%s1294_s1 + $0x68] sm:$0x2] %vm7_vm0, %v333_v41  }
  0xce   :  { %598 = vst.msk [vmem:[%s1294_s1 + $0x2a] sm:$0x1] %vm7_vm0, %v341_v42   ;;  %599 = vst.msk [vmem:[%s1294_s1 + $0x69] sm:$0x2] %vm7_vm0, %v341_v42  }
  0xd0   :  { %v349_v43 = vpop.permute.xlu0 %348  }
  0xd1   :  { %v357_v44 = vpop.permute.xlu1 %356   ;;  %600 = vst.msk [vmem:[%s1294_s1 + $0x2b] sm:$0x1] %vm7_vm0, %v349_v43   ;;  %601 = vst.msk [vmem:[%s1294_s1 + $0x6a] sm:$0x2] %vm7_vm0, %v349_v43  }
  0xd2   :  { %602 = vst.msk [vmem:[%s1294_s1 + $0x2c] sm:$0x1] %vm7_vm0, %v357_v44   ;;  %603 = vst.msk [vmem:[%s1294_s1 + $0x6b] sm:$0x2] %vm7_vm0, %v357_v44  }
  0xd4   :  { %v365_v45 = vpop.permute.xlu0 %364  }
  0xd5   :  { %v373_v46 = vpop.permute.xlu1 %372   ;;  %604 = vst.msk [vmem:[%s1294_s1 + $0x2d] sm:$0x1] %vm7_vm0, %v365_v45   ;;  %605 = vst.msk [vmem:[%s1294_s1 + $0x6c] sm:$0x2] %vm7_vm0, %v365_v45  }
  0xd6   :  { %606 = vst.msk [vmem:[%s1294_s1 + $0x2e] sm:$0x1] %vm7_vm0, %v373_v46   ;;  %607 = vst.msk [vmem:[%s1294_s1 + $0x6d] sm:$0x2] %vm7_vm0, %v373_v46  }
  0xd8   :  { %v381_v47 = vpop.permute.xlu0 %380  }
  0xd9   :  { %v389_v48 = vpop.permute.xlu1 %388   ;;  %608 = vst.msk [vmem:[%s1294_s1 + $0x2f] sm:$0x1] %vm7_vm0, %v381_v47   ;;  %609 = vst.msk [vmem:[%s1294_s1 + $0x6e] sm:$0x2] %vm7_vm0, %v381_v47  }
  0xda   :  { %610 = vst.msk [vmem:[%s1294_s1 + $0x30] sm:$0x1] %vm7_vm0, %v389_v48   ;;  %611 = vst.msk [vmem:[%s1294_s1 + $0x6f] sm:$0x2] %vm7_vm0, %v389_v48  }
  0xdc   :  { %v397_v49 = vpop.permute.xlu0 %396  }
  0xdd   :  { %v405_v50 = vpop.permute.xlu1 %404   ;;  %612 = vst.msk [vmem:[%s1294_s1 + $0x31] sm:$0x1] %vm7_vm0, %v397_v49   ;;  %613 = vst.msk [vmem:[%s1294_s1 + $0x70] sm:$0x2] %vm7_vm0, %v397_v49  }
  0xde   :  { %614 = vst.msk [vmem:[%s1294_s1 + $0x32] sm:$0x1] %vm7_vm0, %v405_v50   ;;  %615 = vst.msk [vmem:[%s1294_s1 + $0x71] sm:$0x2] %vm7_vm0, %v405_v50  }
  0xe0   :  { %v413_v51 = vpop.permute.xlu0 %412  }
  0xe1   :  { %v421_v52 = vpop.permute.xlu1 %420   ;;  %616 = vst.msk [vmem:[%s1294_s1 + $0x33] sm:$0x1] %vm7_vm0, %v413_v51   ;;  %617 = vst.msk [vmem:[%s1294_s1 + $0x72] sm:$0x2] %vm7_vm0, %v413_v51  }
  0xe2   :  { %618 = vst.msk [vmem:[%s1294_s1 + $0x34] sm:$0x1] %vm7_vm0, %v421_v52   ;;  %619 = vst.msk [vmem:[%s1294_s1 + $0x73] sm:$0x2] %vm7_vm0, %v421_v52  }
  0xe4   :  { %v429_v53 = vpop.permute.xlu0 %428  }
  0xe5   :  { %v437_v54 = vpop.permute.xlu1 %436   ;;  %620 = vst.msk [vmem:[%s1294_s1 + $0x35] sm:$0x1] %vm7_vm0, %v429_v53   ;;  %621 = vst.msk [vmem:[%s1294_s1 + $0x74] sm:$0x2] %vm7_vm0, %v429_v53  }
  0xe6   :  { %622 = vst.msk [vmem:[%s1294_s1 + $0x36] sm:$0x1] %vm7_vm0, %v437_v54   ;;  %623 = vst.msk [vmem:[%s1294_s1 + $0x75] sm:$0x2] %vm7_vm0, %v437_v54  }
  0xe8   :  { %v445_v55 = vpop.permute.xlu0 %444  }
  0xe9   :  { %v453_v56 = vpop.permute.xlu1 %452   ;;  %624 = vst.msk [vmem:[%s1294_s1 + $0x37] sm:$0x1] %vm7_vm0, %v445_v55   ;;  %625 = vst.msk [vmem:[%s1294_s1 + $0x76] sm:$0x2] %vm7_vm0, %v445_v55  }
  0xea   :  { %626 = vst.msk [vmem:[%s1294_s1 + $0x38] sm:$0x1] %vm7_vm0, %v453_v56   ;;  %627 = vst.msk [vmem:[%s1294_s1 + $0x77] sm:$0x2] %vm7_vm0, %v453_v56  }
  0xec   :  { %v461_v57 = vpop.permute.xlu0 %460  }
  0xed   :  { %v469_v58 = vpop.permute.xlu1 %468   ;;  %628 = vst.msk [vmem:[%s1294_s1 + $0x39] sm:$0x1] %vm7_vm0, %v461_v57   ;;  %629 = vst.msk [vmem:[%s1294_s1 + $0x78] sm:$0x2] %vm7_vm0, %v461_v57  }
  0xee   :  { %630 = vst.msk [vmem:[%s1294_s1 + $0x3a] sm:$0x1] %vm7_vm0, %v469_v58   ;;  %631 = vst.msk [vmem:[%s1294_s1 + $0x79] sm:$0x2] %vm7_vm0, %v469_v58  }
  0xf0   :  { %v477_v59 = vpop.permute.xlu0 %476  }
  0xf1   :  { %v485_v60 = vpop.permute.xlu1 %484   ;;  %632 = vst.msk [vmem:[%s1294_s1 + $0x3b] sm:$0x1] %vm7_vm0, %v477_v59   ;;  %633 = vst.msk [vmem:[%s1294_s1 + $0x7a] sm:$0x2] %vm7_vm0, %v477_v59  }
  0xf2   :  { %634 = vst.msk [vmem:[%s1294_s1 + $0x3c] sm:$0x1] %vm7_vm0, %v485_v60   ;;  %635 = vst.msk [vmem:[%s1294_s1 + $0x7b] sm:$0x2] %vm7_vm0, %v485_v60  }
  0xf4   :  { %v493_v61 = vpop.permute.xlu0 %492  }
  0xf5   :  { %v501_v62 = vpop.permute.xlu1 %500   ;;  %636 = vst.msk [vmem:[%s1294_s1 + $0x3d] sm:$0x1] %vm7_vm0, %v493_v61   ;;  %637 = vst.msk [vmem:[%s1294_s1 + $0x7c] sm:$0x2] %vm7_vm0, %v493_v61  }
  0xf6   :  { %638 = vst.msk [vmem:[%s1294_s1 + $0x3e] sm:$0x1] %vm7_vm0, %v501_v62   ;;  %639 = vst.msk [vmem:[%s1294_s1 + $0x7d] sm:$0x2] %vm7_vm0, %v501_v62  }
  0xf8   :  { %v509_v63 = vpop.permute.xlu0 %508  }
  0xf9   :  { %640 = vst.msk [vmem:[%s1294_s1 + $0x3f] sm:$0x1] %vm7_vm0, %v509_v63   ;;  %641 = vst.msk [vmem:[%s1294_s1 + $0x7e] sm:$0x2] %vm7_vm0, %v509_v63  }

// kernel: _disc_forward_impl.1
= control target key start
LH: loop header
LB: loop body
LE: loop exit
PB: predicated region body
PF: predicated region fallthrough
CT: control target
= control target key end

     0   :  { %v1601_v0 = vmov 0   ;;  %vm221_vm0 = vcmask 1045504   ;;  %vm196_vm1 = vcmask 97280   ;;  %vm1319_vm2 = vcmask 1040384   ;;  %s2033_s2 = inlined_call_operand.vmem [shape: f32[128,1], index: 2, kind: input, shape index: {}]   ;;  %s2034_s0 = inlined_call_operand.vmem [shape: f32[12,128], index: 0, kind: input, shape index: {}]   ;;  %s2035_s1 = inlined_call_operand.vmem [shape: bf16[128,12], index: 1, kind: input, shape index: {}]   ;;  %s2036_s10 = inlined_call_operand.<no memory space> [shape: f32[1,1], index: 10, kind: input, shape index: {}]   ;;  %s2037_s4 = inlined_call_operand.vmem [shape: f32[128,1], index: 4, kind: input, shape index: {}]   ;;  %s2038_s6 = inlined_call_operand.vmem [shape: f32[128,1], index: 6, kind: input, shape index: {}]   ;;  %s2039_s8 = inlined_call_operand.vmem [shape: f32[128,1], index: 8, kind: input, shape index: {}]   ;;  %s2040_s9 = inlined_call_operand.vmem [shape: f32[128,1], index: 9, kind: input, shape index: {}]   ;;  %s2041_s3 = inlined_call_operand.vmem [shape: bf16[128,128], index: 3, kind: input, shape index: {}]   ;;  %s2042_s5 = inlined_call_operand.vmem [shape: bf16[128,128], index: 5, kind: input, shape index: {}]   ;;  %s2043_s7 = inlined_call_operand.vmem [shape: bf16[128,128], index: 7, kind: input, shape index: {}]   ;;  %s2044_s11 = inlined_call_operand.vmem [shape: f32[2,128], index: 11, kind: output, shape index: {}]  }
   0x1   :  { %1568 = vset.pattern.permute.xlu1 %v1601_v0  ;;  %1567 = vset.pattern.permute.xlu0 %v1601_v0  ;;  %v62_v1 = vld [vmem:[%s2033_s2 + $0x10] sm:$0xff]  ;;  %v60_v2 = vld [vmem:[%s2033_s2] sm:$0xff]  ;;  %v42_v4 = vld [vmem:[%s2034_s0 + $0x8] sm:$0xf]  ;;  %v16_v26 = vstv %s2036_s10 }
   0x2   :  { %v41_v3 = vld [vmem:[%s2034_s0] sm:$0xff]  ;;  %88 = vperm.xlu1 %1568, %v62_v1   ;;  %78 = vperm.xlu0 %1567, %v60_v2   ;;  %v63_v5 = vld [vmem:[%s2033_s2 + $0x18] sm:$0xff]  ;;  %v61_v8 = vld [vmem:[%s2033_s2 + $0x8] sm:$0xff]  ;;  %17 = vst [vmem:[#allocation2] sm:$0x1] %v16_v26 }
   0x3   :  { %v43_v6 = vpack.c.bf16 %v42_v4, %v41_v3  ;;  %v1569_v7 = vld [vmem:[%s2035_s1] sm:$0xff]   ;;  %v1570_v10 = vld [vmem:[%s2035_s1 + $0x8] sm:$0xff]   ;;  %v1571_v12 = vld [vmem:[%s2035_s1 + $0x10] sm:$0xff]  }
   0x4   :  { %1437 = vmatprep.mubr.msk.bf16.mxu0 %vm196_vm1, %v1569_v7  ;;  %v65_v11 = vld [vmem:[%s2033_s2 + $0x28] sm:$0xff]  ;;  %v64_v13 = vld [vmem:[%s2033_s2 + $0x20] sm:$0xff]  ;;  %v67_v14 = vld [vmem:[%s2033_s2 + $0x38] sm:$0xff] }
   0x5   :  { %1565 = vmatprep.subr.msk.bf16.mxu0 %vm221_vm0, %v43_v6  ;;  %v223_v9 = vsel %vm221_vm0, %v43_v6, 0  ;;  %v66_v15 = vld [vmem:[%s2033_s2 + $0x30] sm:$0xff]  ;;  %v1572_v16 = vld [vmem:[%s2035_s1 + $0x18] sm:$0xff]   ;;  %v1573_v17 = vld [vmem:[%s2035_s1 + $0x20] sm:$0xff]  }
   0x6   :  { %1436 = vmatpush3.bf16.msra.mxu0 %v223_v9  ;;  %93 = vperm.xlu1 %1568, %v63_v5   ;;  %v69_v18 = vld [vmem:[%s2033_s2 + $0x48] sm:$0xff]  ;;  %v68_v19 = vld [vmem:[%s2033_s2 + $0x40] sm:$0xff]  ;;  %v71_v20 = vld [vmem:[%s2033_s2 + $0x58] sm:$0xff] }
   0x7   :  { %83 = vperm.xlu0 %1567, %v61_v8   ;;  %v70_v21 = vld [vmem:[%s2033_s2 + $0x50] sm:$0xff]  ;;  %v1574_v22 = vld [vmem:[%s2035_s1 + $0x28] sm:$0xff]   ;;  %v72_v25 = vld [vmem:[%s2033_s2 + $0x60] sm:$0xff] }
   0x8   :  { %v1575_v23 = vld [vmem:[%s2035_s1 + $0x30] sm:$0xff]   ;;  %v73_v24 = vld [vmem:[%s2033_s2 + $0x68] sm:$0xff]  ;;  %v75_v27 = vld [vmem:[%s2033_s2 + $0x78] sm:$0xff] }
   0x9   :  { %1438 = vmatmul.mubr.msk.bf16.vlgmr.msra.gmra.mrb[0].mxu0 %vm196_vm1, %v1570_v10  ;;  %v74_v28 = vld [vmem:[%s2033_s2 + $0x70] sm:$0xff]  ;;  %v1576_v29 = vld [vmem:[%s2035_s1 + $0x38] sm:$0xff]   ;;  %v363_v30 = vld [vmem:[%s2037_s4 + $0x8] sm:$0xff] }
   0xa   :  { %103 = vperm.xlu1 %1568, %v65_v11   ;;  %1441 = vmatprep.mubr.msk.bf16.mxu0 %vm196_vm1, %v1571_v12  ;;  %v362_v31 = vld [vmem:[%s2037_s4] sm:$0xff]  ;;  %v365_v32 = vld [vmem:[%s2037_s4 + $0x18] sm:$0xff]  ;;  %v364_v33 = vld [vmem:[%s2037_s4 + $0x10] sm:$0xff] }
   0xb   :  { %98 = vperm.xlu0 %1567, %v64_v13   ;;  %v367_v34 = vld [vmem:[%s2037_s4 + $0x28] sm:$0xff]  ;;  %v366_v35 = vld [vmem:[%s2037_s4 + $0x20] sm:$0xff]  ;;  %v369_v36 = vld [vmem:[%s2037_s4 + $0x38] sm:$0xff] }
   0xc   :  { %v368_v37 = vld [vmem:[%s2037_s4 + $0x30] sm:$0xff]  ;;  %v371_v38 = vld [vmem:[%s2037_s4 + $0x48] sm:$0xff]  ;;  %v370_v39 = vld [vmem:[%s2037_s4 + $0x40] sm:$0xff] }
   0xd   :  { %v373_v40 = vld [vmem:[%s2037_s4 + $0x58] sm:$0xff]  ;;  %v372_v41 = vld [vmem:[%s2037_s4 + $0x50] sm:$0xff]  ;;  %v375_v42 = vld [vmem:[%s2037_s4 + $0x68] sm:$0xff] }
   0xe   :  { %113 = vperm.xlu1 %1568, %v67_v14   ;;  %v374_v43 = vld [vmem:[%s2037_s4 + $0x60] sm:$0xff]  ;;  %v377_v44 = vld [vmem:[%s2037_s4 + $0x78] sm:$0xff]  ;;  %v376_v45 = vld [vmem:[%s2037_s4 + $0x70] sm:$0xff] }
   0xf   :  { %108 = vperm.xlu0 %1567, %v66_v15   ;;  %v644_v46 = vld [vmem:[%s2038_s6 + $0x8] sm:$0xff]  ;;  %v643_v47 = vld [vmem:[%s2038_s6] sm:$0xff]  ;;  %v646_v48 = vld [vmem:[%s2038_s6 + $0x18] sm:$0xff] }
  0x10   :  { %v645_v49 = vld [vmem:[%s2038_s6 + $0x10] sm:$0xff]  ;;  %v648_v50 = vld [vmem:[%s2038_s6 + $0x28] sm:$0xff]  ;;  %v647_v51 = vld [vmem:[%s2038_s6 + $0x20] sm:$0xff] }
  0x11   :  { %1442 = vmatmul.mubr.msk.bf16.gmra.mrb[4].mxu0 %vm196_vm1, %v1572_v16  ;;  %v650_v52 = vld [vmem:[%s2038_s6 + $0x38] sm:$0xff]  ;;  %v649_v53 = vld [vmem:[%s2038_s6 + $0x30] sm:$0xff]  ;;  %v652_v54 = vld [vmem:[%s2038_s6 + $0x48] sm:$0xff] }
  0x12   :  { %123 = vperm.xlu1 %1568, %v69_v18   ;;  %1445 = vmatprep.mubr.msk.bf16.mxu0 %vm196_vm1, %v1573_v17  ;;  %v651_v55 = vld [vmem:[%s2038_s6 + $0x40] sm:$0xff]  ;;  %v654_v56 = vld [vmem:[%s2038_s6 + $0x58] sm:$0xff]  ;;  %v653_v57 = vld [vmem:[%s2038_s6 + $0x50] sm:$0xff] }
  0x13   :  { %118 = vperm.xlu0 %1567, %v68_v19   ;;  %v656_v58 = vld [vmem:[%s2038_s6 + $0x68] sm:$0xff]  ;;  %v655_v59 = vld [vmem:[%s2038_s6 + $0x60] sm:$0xff]  ;;  %v658_v60 = vld [vmem:[%s2038_s6 + $0x78] sm:$0xff] }
  0x14   :  { %v657_v61 = vld [vmem:[%s2038_s6 + $0x70] sm:$0xff]  ;;  %v925_v62 = vld [vmem:[%s2039_s8 + $0x8] sm:$0xff]  ;;  %v924_v63 = vld [vmem:[%s2039_s8] sm:$0xff] }
  0x15   :  { %v927_v0 = vld [vmem:[%s2039_s8 + $0x18] sm:$0xff]  ;;  %v926_v1 = vld [vmem:[%s2039_s8 + $0x10] sm:$0xff]  ;;  %v929_v2 = vld [vmem:[%s2039_s8 + $0x28] sm:$0xff] }
  0x16   :  { %133 = vperm.xlu1 %1568, %v71_v20   ;;  %v928_v3 = vld [vmem:[%s2039_s8 + $0x20] sm:$0xff]  ;;  %v931_v4 = vld [vmem:[%s2039_s8 + $0x38] sm:$0xff]  ;;  %v930_v5 = vld [vmem:[%s2039_s8 + $0x30] sm:$0xff] }
  0x17   :  { %128 = vperm.xlu0 %1567, %v70_v21   ;;  %v933_v6 = vld [vmem:[%s2039_s8 + $0x48] sm:$0xff]  ;;  %v932_v7 = vld [vmem:[%s2039_s8 + $0x40] sm:$0xff]  ;;  %v935_v8 = vld [vmem:[%s2039_s8 + $0x58] sm:$0xff] }
  0x18   :  { %v934_v9 = vld [vmem:[%s2039_s8 + $0x50] sm:$0xff]  ;;  %v1182_v10 = vld [vmem:[%s2040_s9 + $0x8] sm:$0xff]  ;;  %v1181_v11 = vld [vmem:[%s2040_s9] sm:$0xff] }
  0x19   :  { %1446 = vmatmul.mubr.msk.bf16.gmra.mrb[8].mxu0 %vm196_vm1, %v1574_v22  ;;  %v1190_v12 = vld [vmem:[%s2040_s9 + $0x48] sm:$0xff]  ;;  %v1189_v13 = vld [vmem:[%s2040_s9 + $0x40] sm:$0xff]  ;;  %v1183_v14 = vld [vmem:[%s2040_s9 + $0x10] sm:$0xff] }
  0x1a   :  { %143 = vperm.xlu1 %1568, %v73_v24   ;;  %1449 = vmatprep.mubr.msk.bf16.mxu0 %vm196_vm1, %v1575_v23  ;;  %v936_v15 = vld [vmem:[%s2039_s8 + $0x60] sm:$0xff]  ;;  %v937_v16 = vld [vmem:[%s2039_s8 + $0x68] sm:$0xff]  ;;  %v1191_v18 = vld [vmem:[%s2040_s9 + $0x50] sm:$0xff] }
  0x1b   :  { %138 = vperm.xlu0 %1567, %v72_v25   ;;  %v1577_v17 = vld [vmem:[%s2041_s3] sm:$0xff]   ;;  %v1192_v19 = vld [vmem:[%s2040_s9 + $0x58] sm:$0xff]  ;;  %v938_v22 = vld [vmem:[%s2039_s8 + $0x70] sm:$0xff] }
  0x1c   :  { %1469 = vmatprep.mubr.bf16.mxu1 %v1577_v17  ;;  %v1184_v20 = vld [vmem:[%s2040_s9 + $0x18] sm:$0xff]  ;;  %v1185_v21 = vld [vmem:[%s2040_s9 + $0x20] sm:$0xff]  ;;  %v1194_v25 = vld [vmem:[%s2040_s9 + $0x68] sm:$0xff] }
  0x1d   :  { %v939_v23 = vld [vmem:[%s2039_s8 + $0x78] sm:$0xff]  ;;  %v1193_v24 = vld [vmem:[%s2040_s9 + $0x60] sm:$0xff]  ;;  %v1186_v26 = vld [vmem:[%s2040_s9 + $0x28] sm:$0xff] }
  0x1e   :  { %153 = vperm.xlu1 %1568, %v75_v27   ;;  %v1195_v27 = vld [vmem:[%s2040_s9 + $0x70] sm:$0xff] }
  0x1f   :  { %148 = vperm.xlu0 %1567, %v74_v28   ;;  %v1187_v28 = vld [vmem:[%s2040_s9 + $0x30] sm:$0xff] }
  0x21   :  { %1450 = vmatmul.mubr.msk.bf16.gmra.mrb[12].mxu0 %vm196_vm1, %v1576_v29  ;;  %v1196_v29 = vld [vmem:[%s2040_s9 + $0x78] sm:$0xff] }
  0x22   :  { %385 = vperm.xlu1 %1568, %v363_v30   ;;  %v1188_v30 = vld [vmem:[%s2040_s9 + $0x38] sm:$0xff] }
  0x23   :  { %380 = vperm.xlu0 %1567, %v362_v31   ;;  %v1377_v31 = vld [vmem:[#allocation2] ss:$0 sm:$0xff] }
  0x26   :  { %395 = vperm.xlu1 %1568, %v365_v32  }
  0x27   :  { %390 = vperm.xlu0 %1567, %v364_v33  }
  0x2a   :  { %405 = vperm.xlu1 %1568, %v367_v34  }
  0x2b   :  { %400 = vperm.xlu0 %1567, %v366_v35  }
  0x2e   :  { %415 = vperm.xlu1 %1568, %v369_v36  }
  0x2f   :  { %410 = vperm.xlu0 %1567, %v368_v37  }
  0x32   :  { %425 = vperm.xlu1 %1568, %v371_v38  }
  0x33   :  { %420 = vperm.xlu0 %1567, %v370_v39  }
  0x36   :  { %435 = vperm.xlu1 %1568, %v373_v40  }
  0x37   :  { %430 = vperm.xlu0 %1567, %v372_v41  }
  0x3a   :  { %445 = vperm.xlu1 %1568, %v375_v42  }
  0x3b   :  { %440 = vperm.xlu0 %1567, %v374_v43  }
  0x3e   :  { %455 = vperm.xlu1 %1568, %v377_v44  }
  0x3f   :  { %450 = vperm.xlu0 %1567, %v376_v45  }
  0x42   :  { %666 = vperm.xlu1 %1568, %v644_v46  }
  0x43   :  { %661 = vperm.xlu0 %1567, %v643_v47  }
  0x46   :  { %676 = vperm.xlu1 %1568, %v646_v48  }
  0x47   :  { %671 = vperm.xlu0 %1567, %v645_v49  }
  0x4a   :  { %686 = vperm.xlu1 %1568, %v648_v50  }
  0x4b   :  { %681 = vperm.xlu0 %1567, %v647_v51  }
  0x4e   :  { %696 = vperm.xlu1 %1568, %v650_v52  }
  0x4f   :  { %691 = vperm.xlu0 %1567, %v649_v53  }
  0x52   :  { %706 = vperm.xlu1 %1568, %v652_v54  }
  0x53   :  { %701 = vperm.xlu0 %1567, %v651_v55  }
  0x56   :  { %716 = vperm.xlu1 %1568, %v654_v56  }
  0x57   :  { %711 = vperm.xlu0 %1567, %v653_v57  }
  0x5a   :  { %726 = vperm.xlu1 %1568, %v656_v58  }
  0x5b   :  { %721 = vperm.xlu0 %1567, %v655_v59  }
  0x5e   :  { %736 = vperm.xlu1 %1568, %v658_v60  }
  0x5f   :  { %731 = vperm.xlu0 %1567, %v657_v61  }
  0x62   :  { %947 = vperm.xlu1 %1568, %v925_v62  }
  0x63   :  { %942 = vperm.xlu0 %1567, %v924_v63  }
  0x66   :  { %957 = vperm.xlu1 %1568, %v927_v0  }
  0x67   :  { %952 = vperm.xlu0 %1567, %v926_v1  }
  0x6a   :  { %967 = vperm.xlu1 %1568, %v929_v2  }
  0x6b   :  { %962 = vperm.xlu0 %1567, %v928_v3  }
  0x6e   :  { %977 = vperm.xlu1 %1568, %v931_v4  }
  0x6f   :  { %972 = vperm.xlu0 %1567, %v930_v5  }
  0x72   :  { %987 = vperm.xlu1 %1568, %v933_v6  }
  0x73   :  { %982 = vperm.xlu0 %1567, %v932_v7  }
  0x76   :  { %997 = vperm.xlu1 %1568, %v935_v8  }
  0x77   :  { %992 = vperm.xlu0 %1567, %v934_v9  }
  0x7a   :  { %1204 = vperm.xlu1 %1568, %v1182_v10  }
  0x7b   :  { %1199 = vperm.xlu0 %1567, %v1181_v11  }
  0x7e   :  { %1244 = vperm.xlu1 %1568, %v1190_v12  }
  0x7f   :  { %1239 = vperm.xlu0 %1567, %v1189_v13  }
  0x81   :  { %v79_v32 = vpop.permute.xlu0 %78  ;;  %v89_v33 = vpop.permute.xlu1 %88 }
  0x82   :  { %1209 = vperm.xlu1 %1568, %v1183_v14  }
  0x83   :  { %1002 = vperm.xlu0 %1567, %v936_v15  }
  0x85   :  { %v94_v35 = vpop.permute.xlu1 %93 }
  0x86   :  { %1007 = vperm.xlu1 %1568, %v937_v16   ;;  %v84_v34 = vpop.permute.xlu0 %83 }
  0x87   :  { %1249 = vperm.xlu0 %1567, %v1191_v18  }
  0x89   :  { %v104_v37 = vpop.permute.xlu1 %103 }
  0x8a   :  { %1254 = vperm.xlu1 %1568, %v1192_v19   ;;  %v99_v36 = vpop.permute.xlu0 %98 }
  0x8b   :  { %1214 = vperm.xlu0 %1567, %v1184_v20  }
  0x8d   :  { %v114_v42 = vpop.permute.xlu1 %113 }
  0x8e   :  { %1219 = vperm.xlu1 %1568, %v1185_v21   ;;  %v109_v38 = vpop.permute.xlu0 %108 }
  0x8f   :  { %1012 = vperm.xlu0 %1567, %v938_v22  }
  0x91   :  { %v124_v54 = vpop.permute.xlu1 %123 }
  0x92   :  { %1017 = vperm.xlu1 %1568, %v939_v23   ;;  %v119_v50 = vpop.permute.xlu0 %118 }
  0x93   :  { %1259 = vperm.xlu0 %1567, %v1193_v24  }
  0x95   :  { %v134_v3 = vpop.permute.xlu1 %133 }
  0x96   :  { %1264 = vperm.xlu1 %1568, %v1194_v25   ;;  %v129_v63 = vpop.permute.xlu0 %128 }
  0x97   :  { %1224 = vperm.xlu0 %1567, %v1186_v26  }
  0x99   :  { %v144_v16 = vpop.permute.xlu1 %143 }
  0x9a   :  { %1269 = vperm.xlu1 %1568, %v1195_v27   ;;  %v139_v11 = vpop.permute.xlu0 %138 }
  0x9b   :  { %1229 = vperm.xlu0 %1567, %v1187_v28  }
  0x9d   :  { %v154_v28 = vpop.permute.xlu1 %153 }
  0x9e   :  { %1274 = vperm.xlu1 %1568, %v1196_v29   ;;  %v149_v23 = vpop.permute.xlu0 %148 }
  0x9f   :  { %1234 = vperm.xlu0 %1567, %v1188_v30  }
  0xa3   :  { %1328 = vperm.xlu0 %1567, %v1377_v31  }
  0xdc   :  { %v1439_v39 = vpop.f32.mrb[0].mxu0 }
  0xdd   :  { %v268_v40 = vadd.f32 %v1439_v39, %v89_v33  ;;  %v259_v41 = vpop.f32.mrb[1].mxu0 }
  0xde   :  { %v260_v43 = vadd.f32 %v259_v41, %v79_v32  ;;  %v1440_v44 = vpop.f32.mrb[2].mxu0  ;;  %v1579_v41 = vld [vmem:[%s2041_s3 + $0x10] sm:$0xff]  }
  0xdf   :  { %v271_v45 = vadd.f32 %v1440_v44, %v94_v35  ;;  %v262_v46 = vpop.f32.mrb[3].mxu0  ;;  %v324_v48 = vmax.f32 %v268_v40, 0.0  ;;  %v1578_v40 = vld [vmem:[%s2041_s3 + $0x8] sm:$0xff]  }
  0xe0   :  { %v263_v47 = vadd.f32 %v262_v46, %v84_v34  ;;  %v322_v51 = vmax.f32 %v260_v43, 0.0  ;;  %v1581_v43 = vld [vmem:[%s2041_s3 + $0x20] sm:$0xff]   ;;  %v1582_v44 = vld [vmem:[%s2041_s3 + $0x28] sm:$0xff]   ;;  %v1584_v46 = vld [vmem:[%s2041_s3 + $0x38] sm:$0xff]  }
  0xe1   :  { %v325_v49 = vmax.f32 %v271_v45, 0.0  ;;  %v1583_v45 = vld [vmem:[%s2041_s3 + $0x30] sm:$0xff]  }
  0xe2   :  { %v323_v52 = vmax.f32 %v263_v47, 0.0  ;;  %v1585_v47 = vld [vmem:[%s2042_s5] sm:$0xff]  }
  0xe3   :  { %v339_v53 = vpack.c.bf16 %v325_v49, %v324_v48  ;;  %1501 = vmatprep.mubr.bf16.mxu0 %v1585_v47  ;;  %v381_v48 = vpop.permute.xlu0 %380  ;;  %v386_v49 = vpop.permute.xlu1 %385 }
  0xe4   :  { %v1443_v55 = vpop.f32.mrb[4].mxu0  ;;  %v338_v56 = vpack.c.bf16 %v323_v52, %v322_v51 }
  0xe5   :  { %v284_v57 = vadd.f32 %v1443_v55, %v109_v38  ;;  %v275_v58 = vpop.f32.mrb[5].mxu0 }
  0xe6   :  { %v276_v59 = vadd.f32 %v275_v58, %v99_v36  ;;  %v1444_v60 = vpop.f32.mrb[6].mxu0  ;;  %1453 = vmatprep.subr.bf16.mxu1 %v338_v56 }
  0xe7   :  { %v287_v61 = vadd.f32 %v1444_v60, %v114_v42  ;;  %v278_v62 = vpop.f32.mrb[7].mxu0  ;;  %1454 = vmatpush3.bf16.msra.mxu1 %v338_v56  ;;  %v328_v1 = vmax.f32 %v284_v57, 0.0  ;;  %v1580_v42 = vld [vmem:[%s2041_s3 + $0x18] sm:$0xff]   ;;  %v396_v51 = vpop.permute.xlu1 %395 }
  0xe8   :  { %v279_v0 = vadd.f32 %v278_v62, %v104_v37  ;;  %1455 = vmatprep.subr.bf16.mxu1 %v339_v53  ;;  %v326_v4 = vmax.f32 %v276_v59, 0.0 }
  0xe9   :  { %v329_v2 = vmax.f32 %v287_v61, 0.0 }
  0xea   :  { %v327_v5 = vmax.f32 %v279_v0, 0.0 }
  0xeb   :  { %v341_v6 = vpack.c.bf16 %v329_v2, %v328_v1  ;;  %1456 = vmatpush3.bf16.msra.mxu1 %v339_v53  ;;  %v406_v53 = vpop.permute.xlu1 %405 }
  0xec   :  { %v340_v7 = vpack.c.bf16 %v327_v5, %v326_v4  ;;  %v1447_v8 = vpop.f32.mrb[8].mxu0 }
  0xed   :  { %v300_v9 = vadd.f32 %v1447_v8, %v129_v63  ;;  %v291_v10 = vpop.f32.mrb[9].mxu0 }
  0xee   :  { %v292_v12 = vadd.f32 %v291_v10, %v119_v50  ;;  %v1448_v13 = vpop.f32.mrb[10].mxu0  ;;  %1457 = vmatprep.subr.bf16.mxu1 %v340_v7  ;;  %v391_v50 = vpop.permute.xlu0 %390 }
  0xef   :  { %v303_v14 = vadd.f32 %v1448_v13, %v134_v3  ;;  %v294_v15 = vpop.f32.mrb[11].mxu0  ;;  %1458 = vmatpush3.bf16.msra.mxu1 %v340_v7  ;;  %v332_v18 = vmax.f32 %v300_v9, 0.0  ;;  %v416_v58 = vpop.permute.xlu1 %415 }
  0xf0   :  { %v295_v17 = vadd.f32 %v294_v15, %v124_v54  ;;  %1459 = vmatprep.subr.bf16.mxu1 %v341_v6  ;;  %v330_v20 = vmax.f32 %v292_v12, 0.0 }
  0xf1   :  { %v333_v19 = vmax.f32 %v303_v14, 0.0 }
  0xf2   :  { %v331_v21 = vmax.f32 %v295_v17, 0.0  ;;  %v401_v52 = vpop.permute.xlu0 %400 }
  0xf3   :  { %v343_v22 = vpack.c.bf16 %v333_v19, %v332_v18  ;;  %1460 = vmatpush3.bf16.msra.mxu1 %v341_v6  ;;  %v426_v6 = vpop.permute.xlu1 %425 }
  0xf4   :  { %v342_v24 = vpack.c.bf16 %v331_v21, %v330_v20  ;;  %v1451_v25 = vpop.f32.mrb[12].mxu0 }
  0xf5   :  { %v316_v26 = vadd.f32 %v1451_v25, %v149_v23  ;;  %v307_v27 = vpop.f32.mrb[13].mxu0 }
  0xf6   :  { %v308_v29 = vadd.f32 %v307_v27, %v139_v11  ;;  %v1452_v30 = vpop.f32.mrb[14].mxu0  ;;  %1461 = vmatprep.subr.bf16.mxu1 %v342_v24  ;;  %v411_v54 = vpop.permute.xlu0 %410 }
  0xf7   :  { %v319_v31 = vadd.f32 %v1452_v30, %v154_v28  ;;  %v310_v32 = vpop.f32.mrb[15].mxu0  ;;  %1462 = vmatpush3.bf16.msra.mxu1 %v342_v24  ;;  %v336_v34 = vmax.f32 %v316_v26, 0.0  ;;  %v436_v19 = vpop.permute.xlu1 %435 }
  0xf8   :  { %v311_v33 = vadd.f32 %v310_v32, %v144_v16  ;;  %1463 = vmatprep.subr.bf16.mxu1 %v343_v22  ;;  %v334_v36 = vmax.f32 %v308_v29, 0.0 }
  0xf9   :  { %v337_v35 = vmax.f32 %v319_v31, 0.0 }
  0xfa   :  { %v335_v37 = vmax.f32 %v311_v33, 0.0  ;;  %v421_v2 = vpop.permute.xlu0 %420 }
  0xfb   :  { %v345_v38 = vpack.c.bf16 %v337_v35, %v336_v34  ;;  %1464 = vmatpush3.bf16.msra.mxu1 %v343_v22  ;;  %v446_v32 = vpop.permute.xlu1 %445 }
  0xfc   :  { %v344_v39 = vpack.c.bf16 %v335_v37, %v334_v36 }
  0xfe   :  { %1465 = vmatprep.subr.bf16.mxu1 %v344_v39  ;;  %v431_v15 = vpop.permute.xlu0 %430 }
  0xff   :  { %1466 = vmatpush3.bf16.msra.mxu1 %v344_v39 }
 0x100   :  { %1467 = vmatprep.subr.bf16.mxu1 %v345_v38 }
 0x102   :  { %v441_v27 = vpop.permute.xlu0 %440 }
 0x103   :  { %1468 = vmatpush3.bf16.msra.mxu1 %v345_v38 }
 0x106   :  { %1470 = vmatmul.mubr.bf16.vlgmr.msra.gmra.mrb[0].mxu1 %v1578_v40  ;;  %v451_v39 = vpop.permute.xlu0 %450 }
 0x107   :  { %1473 = vmatprep.mubr.bf16.mxu1 %v1579_v41 }
 0x10e   :  { %1474 = vmatmul.mubr.bf16.gmra.mrb[4].mxu1 %v1580_v42 }
 0x10f   :  { %1477 = vmatprep.mubr.bf16.mxu1 %v1581_v43 }
 0x116   :  { %1478 = vmatmul.mubr.bf16.gmra.mrb[8].mxu1 %v1582_v44  ;;  %v456_v44 = vpop.permute.xlu1 %455 }
 0x117   :  { %1481 = vmatprep.mubr.bf16.mxu1 %v1583_v45 }
 0x11e   :  { %1482 = vmatmul.mubr.bf16.gmra.mrb[12].mxu1 %v1584_v46 }
 0x1d9   :  { %v1471_v55 = vpop.f32.mrb[0].mxu1 }
 0x1da   :  { %v549_v56 = vadd.f32 %v1471_v55, %v391_v50  ;;  %v540_v57 = vpop.f32.mrb[1].mxu1 }
 0x1db   :  { %v541_v59 = vadd.f32 %v540_v57, %v381_v48  ;;  %v1472_v60 = vpop.f32.mrb[2].mxu1  ;;  %v1587_v57 = vld [vmem:[%s2042_s5 + $0x10] sm:$0xff]  }
 0x1dc   :  { %v552_v61 = vadd.f32 %v1472_v60, %v396_v51  ;;  %v543_v62 = vpop.f32.mrb[3].mxu1  ;;  %v605_v0 = vmax.f32 %v549_v56, 0.0  ;;  %v1586_v56 = vld [vmem:[%s2042_s5 + $0x8] sm:$0xff]  }
 0x1dd   :  { %v544_v63 = vadd.f32 %v543_v62, %v386_v49  ;;  %v603_v3 = vmax.f32 %v541_v59, 0.0  ;;  %v1589_v59 = vld [vmem:[%s2042_s5 + $0x20] sm:$0xff]   ;;  %v1590_v60 = vld [vmem:[%s2042_s5 + $0x28] sm:$0xff]   ;;  %v1592_v62 = vld [vmem:[%s2042_s5 + $0x38] sm:$0xff]  }
 0x1de   :  { %v606_v1 = vmax.f32 %v552_v61, 0.0  ;;  %v1591_v61 = vld [vmem:[%s2042_s5 + $0x30] sm:$0xff]  }
 0x1df   :  { %v604_v4 = vmax.f32 %v544_v63, 0.0  ;;  %v1593_v63 = vld [vmem:[%s2043_s7] sm:$0xff]  }
 0x1e0   :  { %v620_v5 = vpack.c.bf16 %v606_v1, %v605_v0  ;;  %v1594_v0 = vld [vmem:[%s2043_s7 + $0x10] sm:$0xff]   ;;  %v662_v1 = vpop.permute.xlu0 %661 }
 0x1e1   :  { %v619_v7 = vpack.c.bf16 %v604_v4, %v603_v3  ;;  %v1475_v8 = vpop.f32.mrb[4].mxu1  ;;  %1537 = vmatprep.mubr.bf16.mxu1 %v1594_v0 }
 0x1e2   :  { %v565_v9 = vadd.f32 %v1475_v8, %v411_v54  ;;  %v556_v10 = vpop.f32.mrb[5].mxu1 }
 0x1e3   :  { %v557_v11 = vadd.f32 %v556_v10, %v401_v52  ;;  %v1476_v12 = vpop.f32.mrb[6].mxu1  ;;  %1485 = vmatprep.subr.bf16.mxu0 %v619_v7 }
 0x1e4   :  { %v568_v13 = vadd.f32 %v1476_v12, %v416_v58  ;;  %v559_v14 = vpop.f32.mrb[7].mxu1  ;;  %1486 = vmatpush3.bf16.msra.mxu0 %v619_v7  ;;  %v609_v17 = vmax.f32 %v565_v9, 0.0  ;;  %v1588_v58 = vld [vmem:[%s2042_s5 + $0x18] sm:$0xff]   ;;  %v672_v3 = vpop.permute.xlu0 %671 }
 0x1e5   :  { %v560_v16 = vadd.f32 %v559_v14, %v406_v53  ;;  %1487 = vmatprep.subr.bf16.mxu0 %v620_v5  ;;  %v607_v20 = vmax.f32 %v557_v11, 0.0 }
 0x1e6   :  { %v610_v18 = vmax.f32 %v568_v13, 0.0 }
 0x1e7   :  { %v608_v21 = vmax.f32 %v560_v16, 0.0 }
 0x1e8   :  { %v622_v22 = vpack.c.bf16 %v610_v18, %v609_v17  ;;  %1488 = vmatpush3.bf16.msra.mxu0 %v620_v5  ;;  %v682_v5 = vpop.permute.xlu0 %681 }
 0x1e9   :  { %v621_v23 = vpack.c.bf16 %v608_v21, %v607_v20  ;;  %v1479_v24 = vpop.f32.mrb[8].mxu1 }
 0x1ea   :  { %v581_v25 = vadd.f32 %v1479_v24, %v431_v15  ;;  %v572_v26 = vpop.f32.mrb[9].mxu1 }
 0x1eb   :  { %v573_v28 = vadd.f32 %v572_v26, %v421_v2  ;;  %v1480_v29 = vpop.f32.mrb[10].mxu1  ;;  %1489 = vmatprep.subr.bf16.mxu0 %v621_v23  ;;  %v667_v2 = vpop.permute.xlu1 %666 }
 0x1ec   :  { %v584_v30 = vadd.f32 %v1480_v29, %v436_v19  ;;  %v575_v31 = vpop.f32.mrb[11].mxu1  ;;  %1490 = vmatpush3.bf16.msra.mxu0 %v621_v23  ;;  %v613_v34 = vmax.f32 %v581_v25, 0.0  ;;  %v692_v7 = vpop.permute.xlu0 %691 }
 0x1ed   :  { %v576_v33 = vadd.f32 %v575_v31, %v426_v6  ;;  %1491 = vmatprep.subr.bf16.mxu0 %v622_v22  ;;  %v611_v36 = vmax.f32 %v573_v28, 0.0 }
 0x1ee   :  { %v614_v35 = vmax.f32 %v584_v30, 0.0 }
 0x1ef   :  { %v612_v37 = vmax.f32 %v576_v33, 0.0  ;;  %v677_v4 = vpop.permute.xlu1 %676 }
 0x1f0   :  { %v624_v38 = vpack.c.bf16 %v614_v35, %v613_v34  ;;  %1492 = vmatpush3.bf16.msra.mxu0 %v622_v22  ;;  %v702_v19 = vpop.permute.xlu0 %701 }
 0x1f1   :  { %v623_v40 = vpack.c.bf16 %v612_v37, %v611_v36  ;;  %v1483_v41 = vpop.f32.mrb[12].mxu1 }
 0x1f2   :  { %v597_v42 = vadd.f32 %v1483_v41, %v451_v39  ;;  %v588_v43 = vpop.f32.mrb[13].mxu1 }
 0x1f3   :  { %v589_v45 = vadd.f32 %v588_v43, %v441_v27  ;;  %v1484_v46 = vpop.f32.mrb[14].mxu1  ;;  %1493 = vmatprep.subr.bf16.mxu0 %v623_v40  ;;  %v687_v6 = vpop.permute.xlu1 %686 }
 0x1f4   :  { %v600_v47 = vadd.f32 %v1484_v46, %v456_v44  ;;  %v591_v48 = vpop.f32.mrb[15].mxu1  ;;  %1494 = vmatpush3.bf16.msra.mxu0 %v623_v40  ;;  %v617_v50 = vmax.f32 %v597_v42, 0.0 }
 0x1f5   :  { %v592_v49 = vadd.f32 %v591_v48, %v446_v32  ;;  %1495 = vmatprep.subr.bf16.mxu0 %v624_v38  ;;  %v615_v52 = vmax.f32 %v589_v45, 0.0  ;;  %v712_v32 = vpop.permute.xlu0 %711 }
 0x1f6   :  { %v618_v51 = vmax.f32 %v600_v47, 0.0 }
 0x1f7   :  { %v616_v53 = vmax.f32 %v592_v49, 0.0  ;;  %v697_v11 = vpop.permute.xlu1 %696 }
 0x1f8   :  { %v626_v54 = vpack.c.bf16 %v618_v51, %v617_v50  ;;  %1496 = vmatpush3.bf16.msra.mxu0 %v624_v38 }
 0x1f9   :  { %v625_v55 = vpack.c.bf16 %v616_v53, %v615_v52  ;;  %v722_v44 = vpop.permute.xlu0 %721 }
 0x1fb   :  { %1497 = vmatprep.subr.bf16.mxu0 %v625_v55  ;;  %v707_v23 = vpop.permute.xlu1 %706 }
 0x1fc   :  { %1498 = vmatpush3.bf16.msra.mxu0 %v625_v55 }
 0x1fd   :  { %1499 = vmatprep.subr.bf16.mxu0 %v626_v54 }
 0x1ff   :  { %v717_v36 = vpop.permute.xlu1 %716 }
 0x200   :  { %1500 = vmatpush3.bf16.msra.mxu0 %v626_v54 }
 0x203   :  { %1502 = vmatmul.mubr.bf16.vlgmr.msra.gmra.mrb[16].mxu0 %v1586_v56  ;;  %v727_v49 = vpop.permute.xlu1 %726  ;;  %v732_v56 = vpop.permute.xlu0 %731 }
 0x204   :  { %1505 = vmatprep.mubr.bf16.mxu0 %v1587_v57 }
 0x20b   :  { %1506 = vmatmul.mubr.bf16.gmra.mrb[20].mxu0 %v1588_v58 }
 0x20c   :  { %1509 = vmatprep.mubr.bf16.mxu0 %v1589_v59 }
 0x213   :  { %1510 = vmatmul.mubr.bf16.gmra.mrb[24].mxu0 %v1590_v60 }
 0x214   :  { %1513 = vmatprep.mubr.bf16.mxu0 %v1591_v61  ;;  %v737_v61 = vpop.permute.xlu1 %736 }
 0x21b   :  { %1514 = vmatmul.mubr.bf16.gmra.mrb[28].mxu0 %v1592_v62 }
 0x21c   :  { %1533 = vmatprep.mubr.bf16.mxu0 %v1593_v63 }
 0x2d6   :  { %v1503_v8 = vpop.f32.mrb[16].mxu0 }
 0x2d7   :  { %v830_v9 = vadd.f32 %v1503_v8, %v672_v3  ;;  %v821_v10 = vpop.f32.mrb[17].mxu0 }
 0x2d8   :  { %v822_v12 = vadd.f32 %v821_v10, %v662_v1  ;;  %v1504_v13 = vpop.f32.mrb[18].mxu0  ;;  %v1596_v10 = vld [vmem:[%s2043_s7 + $0x18] sm:$0xff]  }
 0x2d9   :  { %v833_v14 = vadd.f32 %v1504_v13, %v677_v4  ;;  %v824_v15 = vpop.f32.mrb[19].mxu0  ;;  %v886_v17 = vmax.f32 %v830_v9, 0.0  ;;  %v1595_v9 = vld [vmem:[%s2043_s7 + $0x8] sm:$0xff]   ;;  %v1599_v13 = vld [vmem:[%s2043_s7 + $0x30] sm:$0xff]  }
 0x2da   :  { %v825_v16 = vadd.f32 %v824_v15, %v667_v2  ;;  %v884_v20 = vmax.f32 %v822_v12, 0.0  ;;  %v1598_v12 = vld [vmem:[%s2043_s7 + $0x28] sm:$0xff]   ;;  %v943_v15 = vpop.permute.xlu0 %942 }
 0x2db   :  { %v887_v18 = vmax.f32 %v833_v14, 0.0  ;;  %v1600_v14 = vld [vmem:[%s2043_s7 + $0x38] sm:$0xff]  }
 0x2dc   :  { %v885_v21 = vmax.f32 %v825_v16, 0.0  ;;  %v948_v16 = vpop.permute.xlu1 %947 }
 0x2dd   :  { %v901_v22 = vpack.c.bf16 %v887_v18, %v886_v17 }
 0x2de   :  { %v900_v24 = vpack.c.bf16 %v885_v21, %v884_v20  ;;  %v1507_v25 = vpop.f32.mrb[20].mxu0  ;;  %v953_v17 = vpop.permute.xlu0 %952 }
 0x2df   :  { %v846_v26 = vadd.f32 %v1507_v25, %v692_v7  ;;  %v837_v27 = vpop.f32.mrb[21].mxu0 }
 0x2e0   :  { %v838_v28 = vadd.f32 %v837_v27, %v682_v5  ;;  %v1508_v29 = vpop.f32.mrb[22].mxu0  ;;  %1517 = vmatprep.subr.bf16.mxu0 %v900_v24  ;;  %1549 = vmatprep.subr.bf16.mxu1 %v900_v24  ;;  %v958_v18 = vpop.permute.xlu1 %957 }
 0x2e1   :  { %v849_v30 = vadd.f32 %v1508_v29, %v697_v11  ;;  %v840_v31 = vpop.f32.mrb[23].mxu0  ;;  %1518 = vmatpush3.bf16.msra.mxu0 %v900_v24  ;;  %1557 = vmatpush3.bf16.msra.mxu1 %v900_v24  ;;  %v890_v34 = vmax.f32 %v846_v26, 0.0  ;;  %v1597_v11 = vld [vmem:[%s2043_s7 + $0x20] sm:$0xff]  }
 0x2e2   :  { %v841_v33 = vadd.f32 %v840_v31, %v687_v6  ;;  %1519 = vmatprep.subr.bf16.mxu0 %v901_v22  ;;  %1550 = vmatprep.subr.bf16.mxu1 %v901_v22  ;;  %v888_v37 = vmax.f32 %v838_v28, 0.0 }
 0x2e3   :  { %v891_v35 = vmax.f32 %v849_v30, 0.0 }
 0x2e4   :  { %v889_v38 = vmax.f32 %v841_v33, 0.0  ;;  %v968_v20 = vpop.permute.xlu1 %967 }
 0x2e5   :  { %v903_v39 = vpack.c.bf16 %v891_v35, %v890_v34  ;;  %1520 = vmatpush3.bf16.msra.mxu0 %v901_v22  ;;  %1558 = vmatpush3.bf16.msra.mxu1 %v901_v22 }
 0x2e6   :  { %v902_v40 = vpack.c.bf16 %v889_v38, %v888_v37  ;;  %v1511_v41 = vpop.f32.mrb[24].mxu0 }
 0x2e7   :  { %v862_v42 = vadd.f32 %v1511_v41, %v712_v32  ;;  %v853_v43 = vpop.f32.mrb[25].mxu0 }
 0x2e8   :  { %v854_v45 = vadd.f32 %v853_v43, %v702_v19  ;;  %v1512_v46 = vpop.f32.mrb[26].mxu0  ;;  %1521 = vmatprep.subr.bf16.mxu0 %v902_v40  ;;  %1551 = vmatprep.subr.bf16.mxu1 %v902_v40  ;;  %v963_v19 = vpop.permute.xlu0 %962 }
 0x2e9   :  { %v865_v47 = vadd.f32 %v1512_v46, %v717_v36  ;;  %v856_v48 = vpop.f32.mrb[27].mxu0  ;;  %1522 = vmatpush3.bf16.msra.mxu0 %v902_v40  ;;  %1559 = vmatpush3.bf16.msra.mxu1 %v902_v40  ;;  %v894_v51 = vmax.f32 %v862_v42, 0.0  ;;  %v978_v22 = vpop.permute.xlu1 %977 }
 0x2ea   :  { %v857_v50 = vadd.f32 %v856_v48, %v707_v23  ;;  %1523 = vmatprep.subr.bf16.mxu0 %v903_v39  ;;  %1552 = vmatprep.subr.bf16.mxu1 %v903_v39  ;;  %v892_v53 = vmax.f32 %v854_v45, 0.0 }
 0x2eb   :  { %v895_v52 = vmax.f32 %v865_v47, 0.0 }
 0x2ec   :  { %v893_v54 = vmax.f32 %v857_v50, 0.0  ;;  %v973_v21 = vpop.permute.xlu0 %972 }
 0x2ed   :  { %v905_v55 = vpack.c.bf16 %v895_v52, %v894_v51  ;;  %1524 = vmatpush3.bf16.msra.mxu0 %v903_v39  ;;  %1560 = vmatpush3.bf16.msra.mxu1 %v903_v39  ;;  %v988_v24 = vpop.permute.xlu1 %987 }
 0x2ee   :  { %v904_v57 = vpack.c.bf16 %v893_v54, %v892_v53  ;;  %v1515_v58 = vpop.f32.mrb[28].mxu0 }
 0x2ef   :  { %v878_v59 = vadd.f32 %v1515_v58, %v732_v56  ;;  %v869_v60 = vpop.f32.mrb[29].mxu0 }
 0x2f0   :  { %v870_v62 = vadd.f32 %v869_v60, %v722_v44  ;;  %v1516_v63 = vpop.f32.mrb[30].mxu0  ;;  %1525 = vmatprep.subr.bf16.mxu0 %v904_v57  ;;  %1553 = vmatprep.subr.bf16.mxu1 %v904_v57  ;;  %v983_v23 = vpop.permute.xlu0 %982 }
 0x2f1   :  { %v881_v0 = vadd.f32 %v1516_v63, %v737_v61  ;;  %v872_v1 = vpop.f32.mrb[31].mxu0  ;;  %1526 = vmatpush3.bf16.msra.mxu0 %v904_v57  ;;  %1561 = vmatpush3.bf16.msra.mxu1 %v904_v57  ;;  %v898_v3 = vmax.f32 %v878_v59, 0.0  ;;  %v998_v26 = vpop.permute.xlu1 %997 }
 0x2f2   :  { %v873_v2 = vadd.f32 %v872_v1, %v727_v49  ;;  %1527 = vmatprep.subr.bf16.mxu0 %v905_v55  ;;  %1554 = vmatprep.subr.bf16.mxu1 %v905_v55  ;;  %v896_v5 = vmax.f32 %v870_v62, 0.0 }
 0x2f3   :  { %v899_v4 = vmax.f32 %v881_v0, 0.0 }
 0x2f4   :  { %v897_v6 = vmax.f32 %v873_v2, 0.0  ;;  %v993_v25 = vpop.permute.xlu0 %992 }
 0x2f5   :  { %v907_v7 = vpack.c.bf16 %v899_v4, %v898_v3  ;;  %1528 = vmatpush3.bf16.msra.mxu0 %v905_v55  ;;  %1562 = vmatpush3.bf16.msra.mxu1 %v905_v55  ;;  %v1205_v28 = vpop.permute.xlu1 %1204 }
 0x2f6   :  { %v906_v8 = vpack.c.bf16 %v897_v6, %v896_v5 }
 0x2f8   :  { %1529 = vmatprep.subr.bf16.mxu0 %v906_v8  ;;  %1555 = vmatprep.subr.bf16.mxu1 %v906_v8  ;;  %v1200_v27 = vpop.permute.xlu0 %1199 }
 0x2f9   :  { %1530 = vmatpush3.bf16.msra.mxu0 %v906_v8  ;;  %1563 = vmatpush3.bf16.msra.mxu1 %v906_v8  ;;  %v1245_v30 = vpop.permute.xlu1 %1244 }
 0x2fa   :  { %1531 = vmatprep.subr.bf16.mxu0 %v907_v7  ;;  %1556 = vmatprep.subr.bf16.mxu1 %v907_v7 }
 0x2fc   :  { %v1240_v29 = vpop.permute.xlu0 %1239 }
 0x2fd   :  { %1532 = vmatpush3.bf16.msra.mxu0 %v907_v7  ;;  %1564 = vmatpush3.bf16.msra.mxu1 %v907_v7  ;;  %v1210_v32 = vpop.permute.xlu1 %1209 }
 0x300   :  { %1534 = vmatmul.mubr.bf16.vlgmr.msra.gmra.mrb[32].mxu0 %v1595_v9  ;;  %1538 = vmatmul.mubr.bf16.vlgmr.msra.gmra.mrb[16].mxu1 %v1596_v10  ;;  %v2015_v31 = vpop.permute.xlu0 %1002 }
 0x301   :  { %1541 = vmatprep.mubr.bf16.mxu1 %v1597_v11  ;;  %v2019_v34 = vpop.permute.xlu1 %1007 }
 0x304   :  { %v2017_v33 = vpop.permute.xlu0 %1249 }
 0x305   :  { %v2021_v36 = vpop.permute.xlu1 %1254 }
 0x308   :  { %1542 = vmatmul.mubr.bf16.gmra.mrb[20].mxu1 %v1598_v12  ;;  %v1215_v35 = vpop.permute.xlu0 %1214 }
 0x309   :  { %1545 = vmatprep.mubr.bf16.mxu1 %v1599_v13  ;;  %v1220_v38 = vpop.permute.xlu1 %1219 }
 0x30c   :  { %v1013_v37 = vpop.permute.xlu0 %1012 }
 0x30d   :  { %v1018_v62 = vpop.permute.xlu1 %1017 }
 0x310   :  { %1546 = vmatmul.mubr.bf16.gmra.mrb[24].mxu1 %v1600_v14  ;;  %v2023_v39 = vpop.permute.xlu0 %1259 }
 0x314   :  { %v1225_v54 = vpop.permute.xlu0 %1224 }
 0x318   :  { %v1230_v11 = vpop.permute.xlu0 %1229 }
 0x3d3   :  { %v1535_v40 = vpop.f32.mrb[32].mxu0  ;;  %v1539_v41 = vpop.f32.mrb[16].mxu1 }
 0x3d4   :  { %v1102_v42 = vpop.f32.mrb[33].mxu0  ;;  %v1118_v43 = vpop.f32.mrb[17].mxu1  ;;  %v1111_v44 = vadd.f32 %v1535_v40, %v953_v17  ;;  %v1127_v63 = vadd.f32 %v1539_v41, %v973_v21 }
 0x3d5   :  { %v1103_v45 = vadd.f32 %v1102_v42, %v943_v15  ;;  %v1536_v46 = vpop.f32.mrb[34].mxu0  ;;  %v1540_v47 = vpop.f32.mrb[18].mxu1  ;;  %v1119_v53 = vadd.f32 %v1118_v43, %v963_v19 }
 0x3d6   :  { %v1105_v48 = vpop.f32.mrb[35].mxu0  ;;  %v1121_v49 = vpop.f32.mrb[19].mxu1  ;;  %v1114_v51 = vadd.f32 %v1536_v46, %v958_v18  ;;  %v1167_v55 = vmax.f32 %v1111_v44, 0.0  ;;  %v1130_v7 = vadd.f32 %v1540_v47, %v978_v22 }
 0x3d7   :  { %v1165_v50 = vmax.f32 %v1103_v45, 0.0  ;;  %v1106_v52 = vadd.f32 %v1105_v48, %v948_v16  ;;  %v1122_v57 = vadd.f32 %v1121_v49, %v968_v20  ;;  %v1169_v0 = vmax.f32 %v1119_v53, 0.0  ;;  %v1265_v21 = vpop.permute.xlu1 %1264 }
 0x3d8   :  { %v1168_v59 = vmax.f32 %v1114_v51, 0.0  ;;  %v1279_v2 = vmul.f32 %v1210_v32, %v1167_v55  ;;  %v1171_v16 = vmax.f32 %v1127_v63, 0.0 }
 0x3d9   :  { %v1166_v56 = vmax.f32 %v1106_v52, 0.0  ;;  %v1277_v58 = vmul.f32 %v1200_v27, %v1165_v50  ;;  %v1170_v8 = vmax.f32 %v1122_v57, 0.0  ;;  %v1281_v17 = vmul.f32 %v1220_v38, %v1169_v0 }
 0x3da   :  { %v1280_v12 = vmul.f32 %v1215_v35, %v1168_v59  ;;  %v1172_v27 = vmax.f32 %v1130_v7, 0.0  ;;  %v1235_v35 = vpop.permute.xlu0 %1234 }
 0x3db   :  { %v1278_v60 = vmul.f32 %v1205_v28, %v1166_v56  ;;  %v1543_v61 = vpop.f32.mrb[20].mxu1 }
 0x3dc   :  { %v1134_v1 = vpop.f32.mrb[21].mxu1  ;;  %v1143_v4 = vadd.f32 %v1543_v61, %v993_v25  ;;  %v1282_v25 = vmul.f32 %v1225_v54, %v1170_v8  ;;  %v1284_v46 = vmul.f32 %v1235_v35, %v1172_v27 }
 0x3dd   :  { %v1293_v3 = vadd.f32 %v1278_v60, %v1277_v58  ;;  %v1135_v5 = vadd.f32 %v1134_v1, %v983_v23  ;;  %v1544_v6 = vpop.f32.mrb[22].mxu1 }
 0x3de   :  { %v1146_v9 = vadd.f32 %v1544_v6, %v998_v26  ;;  %v1137_v10 = vpop.f32.mrb[23].mxu1  ;;  %v1175_v19 = vmax.f32 %v1143_v4, 0.0  ;;  %v1283_v26 = vmul.f32 %v1230_v11, %v1171_v16 }
 0x3df   :  { %v1294_v13 = vadd.f32 %v1293_v3, %v1279_v2  ;;  %v1173_v14 = vmax.f32 %v1135_v5, 0.0  ;;  %v1138_v15 = vadd.f32 %v1137_v10, %v988_v24 }
 0x3e0   :  { %v1176_v28 = vmax.f32 %v1146_v9, 0.0  ;;  %v1287_v24 = vmul.f32 %v2017_v33, %v1175_v19  ;;  %v1329_v9 = vpop.permute.xlu0 %1328 }
 0x3e1   :  { %v1295_v18 = vadd.f32 %v1294_v13, %v1280_v12  ;;  %v1174_v20 = vmax.f32 %v1138_v15, 0.0  ;;  %v1285_v32 = vmul.f32 %v1240_v29, %v1173_v14 }
 0x3e2   :  { %v1288_v47 = vmul.f32 %v2021_v36, %v1176_v28 }
 0x3e3   :  { %v1296_v23 = vadd.f32 %v1295_v18, %v1281_v17  ;;  %v1286_v22 = vmul.f32 %v1245_v30, %v1174_v20  ;;  %v1547_v40 = vpop.f32.mrb[24].mxu1 }
 0x3e4   :  { %v1159_v41 = vadd.f32 %v1547_v40, %v1013_v37  ;;  %v1150_v42 = vpop.f32.mrb[25].mxu1  ;;  %v1270_v37 = vpop.permute.xlu1 %1269 }
 0x3e5   :  { %v1297_v43 = vadd.f32 %v1296_v23, %v1282_v25  ;;  %v1306_v44 = vadd.f32 %v1286_v22, %v1285_v32  ;;  %v1151_v38 = vadd.f32 %v1150_v42, %v2015_v31  ;;  %v1548_v45 = vpop.f32.mrb[26].mxu1 }
 0x3e6   :  { %v1162_v48 = vadd.f32 %v1548_v45, %v1018_v62  ;;  %v1153_v49 = vpop.f32.mrb[27].mxu1  ;;  %v1179_v52 = vmax.f32 %v1159_v41, 0.0 }
 0x3e7   :  { %v1298_v50 = vadd.f32 %v1297_v43, %v1283_v26  ;;  %v1307_v29 = vadd.f32 %v1306_v44, %v1287_v24  ;;  %v1177_v30 = vmax.f32 %v1151_v38, 0.0  ;;  %v1154_v51 = vadd.f32 %v1153_v49, %v2019_v34 }
 0x3e8   :  { %v1180_v57 = vmax.f32 %v1162_v48, 0.0  ;;  %v1291_v36 = vmul.f32 %v1270_v37, %v1179_v52  ;;  %v1275_v61 = vpop.permute.xlu1 %1274 }
 0x3e9   :  { %v1299_v53 = vadd.f32 %v1298_v50, %v1284_v46  ;;  %v1289_v54 = vmul.f32 %v2023_v39, %v1177_v30  ;;  %v1308_v33 = vadd.f32 %v1307_v29, %v1288_v47  ;;  %v1178_v55 = vmax.f32 %v1154_v51, 0.0 }
 0x3ea   :  { %v1292_v62 = vmul.f32 %v1275_v61, %v1180_v57 }
 0x3eb   :  { %v1300_v56 = vrot.slane %v1299_v53, 4  ;;  %v1309_v31 = vadd.f32 %v1308_v33, %v1289_v54  ;;  %v1290_v58 = vmul.f32 %v1265_v21, %v1178_v55 }
 0x3ed   :  { %v1301_v59 = vadd.f32 %v1300_v56, %v1299_v53  ;;  %v1310_v60 = vadd.f32 %v1309_v31, %v1290_v58 }
 0x3ef   :  { %v1311_v63 = vadd.f32 %v1310_v60, %v1291_v36  ;;  %v1302_v0 = vrot.slane %v1301_v59, 2 }
 0x3f1   :  { %v1312_v1 = vadd.f32 %v1311_v63, %v1292_v62  ;;  %v1303_v2 = vadd.f32 %v1302_v0, %v1301_v59 }
 0x3f3   :  { %v1313_v34 = vrot.slane %v1312_v1, 4  ;;  %v1304_v5 = vrot.slane %v1303_v2, 1 }
 0x3f5   :  { %v1314_v3 = vadd.f32 %v1313_v34, %v1312_v1  ;;  %v1305_v7 = vadd.f32 %v1304_v5, %v1303_v2 }
 0x3f7   :  { %v1315_v4 = vrot.slane %v1314_v3, 2 }
 0x3f9   :  { %v1316_v39 = vadd.f32 %v1315_v4, %v1314_v3 }
 0x3fb   :  { %v1317_v6 = vrot.slane %v1316_v39, 1 }
 0x3fd   :  { %v1318_v8 = vadd.f32 %v1317_v6, %v1316_v39 }
 0x3ff   :  { %v1320_v10 = vsel %vm1319_vm2, %v1305_v7, %v1318_v8 }
 0x400   :  { %v1331_v11 = vadd.f32 %v1329_v9, %v1320_v10 }
 0x402   :  { %1332 = vst [vmem:[%s2044_s11] sm:$0x3] %v1331_v11 }

</bundles_post_ra>
